<compile_context>
chip_gen: v7x
topology: tpu7x:2x2x1
jax: 0.10.0
libtpu: 0.0.40
codegen_flags: <defaults>
</compile_context>

<pallas_src>
import functools

import jax
import jax.numpy as jnp
from jax.experimental import pallas as pl
from jax.experimental.pallas import tpu as pltpu


# ----------------------------- kernel helpers ------------------------------ #

def _layernorm(h, gamma, beta, eps=1e-5):
    # h: (N, D); gamma/beta: (1, D).  Single-pass: E[x] and E[x^2] are
    # independent reductions (no dependent second pass over (x - mu)).
    mu = jnp.mean(h, axis=-1, keepdims=True)
    ms = jnp.mean(h * h, axis=-1, keepdims=True)
    var = ms - mu * mu
    return (h - mu) * jax.lax.rsqrt(var + eps) * gamma + beta


def _mha(qT, kT, vT, n_heads, head_dim):
    """Multi-head attention on feature-major slabs.

    qT: (D, Sq); kT/vT: (D, Sk).  K/V are kept feature-major ((H, dh, Sk))
    straight off a sublane-dim reshape; only Q needs a minor-dim swap, and the
    score / PV einsums contract the last dims directly.  The PV einsum emits
    the context feature-major so the head merge is a reshape + one 2D
    transpose.  The softmax scale is already folded into the Q projection.
    Returns the context as (Sq, D).
    """
    sq = qT.shape[1]
    sk = kT.shape[1]
    qh = jnp.swapaxes(qT.reshape(n_heads, head_dim, sq), 1, 2)   # (H, Sq, dh)
    kh = kT.reshape(n_heads, head_dim, sk)                       # (H, dh, Sk)
    vh = vT.reshape(n_heads, head_dim, sk)                       # (H, dh, Sk)

    logits = jnp.einsum("hqd,hds->hqs", qh, kh,
                        preferred_element_type=jnp.float32)      # (H, Sq, Sk)
    logits = logits - jnp.max(logits, axis=-1, keepdims=True)
    p = jnp.exp(logits)
    # TODO(synk): production build: pl.reciprocal(..., approx=True) (EUP slot);
    # kept exact here to preserve the tight 1e-4 parity check.
    p = p * pl.reciprocal(jnp.sum(p, axis=-1, keepdims=True), approx=False)

    o = jnp.einsum("hds,hqs->hdq", vh, p,
                   preferred_element_type=jnp.float32)           # (H, dh, Sq)
    return jnp.swapaxes(o.reshape(n_heads * head_dim, sq), 0, 1)  # (Sq, D)


# -------------------------------- kernel ----------------------------------- #

def _decoder_layer_kernel(x_ref, mem_ref, ln_g_ref, ln_b_ref,
                          w_self_ref, b_self_ref,
                          w_cq_ref, b_cq_ref, w_ckv_ref, b_ckv_ref,
                          out_ref, *, n_heads):
    # TODO(synk): mask=None path only; masked_fill(mask==0, -inf) not implemented.
    Bb, S, D = x_ref.shape
    Sm = mem_ref.shape[1]
    H = n_heads
    dh = D // H

    x = x_ref[...].reshape(Bb * S, D)        # fold batch into rows for MXU ops
    mem = mem_ref[...].reshape(Bb * Sm, D)

    # ---- hoisted: cross-attn K/V projection depends only on `memory` ------ #
    # Issued back-to-back with the self-attn QKV matmul below, keeping the MXU
    # pipeline full and off the serial self->cross dependency chain.
    kv = jnp.dot(mem, w_ckv_ref[...],
                 preferred_element_type=jnp.float32) + b_ckv_ref[...]   # (Bb*Sm, 2D)

    # ---- self-attention: x1 = attn(norm1(x), ...) + x --------------------- #
    x1n = _layernorm(x, ln_g_ref[0], ln_b_ref[0])
    qkv = jnp.dot(x1n, w_self_ref[...],
                  preferred_element_type=jnp.float32) + b_self_ref[...]  # (Bb*S, 3D)
    ctx = []
    for b in range(Bb):   # Bb is 1 or B (tiny); unrolled, batches overlap in scheduling
        pT = jnp.swapaxes(qkv[b * S:(b + 1) * S, :], 0, 1)               # (3D, S)
        ctx.append(_mha(pT[0 * D:1 * D], pT[1 * D:2 * D], pT[2 * D:3 * D], H, dh))
    x1 = (ctx[0] if Bb == 1 else jnp.concatenate(ctx, axis=0)) + x

    # ---- cross-attention: x2 = attn(norm2(x1), mem, mem) + x1 ------------- #
    x2n = _layernorm(x1, ln_g_ref[1], ln_b_ref[1])
    qc = jnp.dot(x2n, w_cq_ref[...],
                 preferred_element_type=jnp.float32) + b_cq_ref[...]     # (Bb*S, D)
    ctx = []
    for b in range(Bb):
        qT = jnp.swapaxes(qc[b * S:(b + 1) * S, :], 0, 1)                # (D, S)
        kvT = jnp.swapaxes(kv[b * Sm:(b + 1) * Sm, :], 0, 1)             # (2D, Sm)
        ctx.append(_mha(qT, kvT[0 * D:1 * D], kvT[1 * D:2 * D], H, dh))
    x2 = (ctx[0] if Bb == 1 else jnp.concatenate(ctx, axis=0)) + x1

    # ---- x3 = norm3(x2); reference discards ffn(x3) and returns x3 -------- #
    # (At toy D=32 this store is a masked 32-lane vst; at production D>=128 it
    # is unmasked, so no lane-dense relayout is done here.)
    out_ref[...] = _layernorm(x2, ln_g_ref[2], ln_b_ref[2]).reshape(Bb, S, D)


def decoder_layer_pallas(x, memory, ln_g, ln_b,
                         w_self, b_self, w_cq, b_cq, w_ckv, b_ckv, n_heads,
                         *, grid_over_batch=False):
    B, S, D = x.shape
    Sm = memory.shape[1]
    kernel = functools.partial(_decoder_layer_kernel, n_heads=n_heads)

    if grid_over_batch:
        # v7x (2 TensorCores): split the batch across cores.  For production
        # sizes also add a "parallel" S-tile axis for pipeline depth per core.
        grid = (B,)
        bx = 1
        x_map = lambda b: (b, 0, 0)
        sem = ("parallel",)
    else:
        # v5e/v6e (single TensorCore): fold the batch into one grid step so the
        # per-step fixed overhead is paid once and the projections run batched.
        grid = (1,)
        bx = B
        x_map = lambda b: (0, 0, 0)
        sem = ("arbitrary",)

    const2 = lambda b: (0, 0)
    const3 = lambda b: (0, 0, 0)
    # For production sizes: mark the constant weight/bias specs
    # pipeline_mode=pl.Buffered(1) and set vmem_limit_bytes in CompilerParams.
    return pl.pallas_call(
        kernel,
        out_shape=jax.ShapeDtypeStruct((B, S, D), jnp.float32),
        grid=grid,
        in_specs=[
            pl.BlockSpec((bx, S, D), x_map),      # x
            pl.BlockSpec((bx, Sm, D), x_map),     # memory
            pl.BlockSpec((3, 1, D), const3),      # LN gammas
            pl.BlockSpec((3, 1, D), const3),      # LN betas
            pl.BlockSpec((D, 3 * D), const2),     # self-attn fused Wqkv^T (Q pre-scaled)
            pl.BlockSpec((1, 3 * D), const2),     # self-attn fused bias   (Q pre-scaled)
            pl.BlockSpec((D, D), const2),         # cross-attn Wq^T (pre-scaled)
            pl.BlockSpec((1, D), const2),         # cross-attn bq   (pre-scaled)
            pl.BlockSpec((D, 2 * D), const2),     # cross-attn fused Wkv^T
            pl.BlockSpec((1, 2 * D), const2),     # cross-attn fused bkv
        ],
        out_specs=pl.BlockSpec((bx, S, D), x_map),
        compiler_params=pltpu.CompilerParams(dimension_semantics=sem),
    )(x, memory, ln_g, ln_b, w_self, b_self, w_cq, b_cq, w_ckv, b_ckv)


# ------------------------ pure-JAX reference check -------------------------- #

def _reference(x, memory, params, n_heads):
    D = x.shape[-1]

    def ln(h, g, b):
        mu = h.mean(-1, keepdims=True)
        var = ((h - mu) ** 2).mean(-1, keepdims=True)
        return (h - mu) / jnp.sqrt(var + 1e-5) * g + b

    def attn(qx, kx, vx, Wq, bq, Wk, bk, Wv, bv):
        B, Sq, _ = qx.shape
        Sk = kx.shape[1]
        dh = D // n_heads
        q = (qx @ Wq.T + bq).reshape(B, Sq, n_heads, dh).transpose(0, 2, 1, 3)
        k = (kx @ Wk.T + bk).reshape(B, Sk, n_heads, dh).transpose(0, 2, 1, 3)
        v = (vx @ Wv.T + bv).reshape(B, Sk, n_heads, dh).transpose(0, 2, 1, 3)
        w = q @ jnp.swapaxes(k, -2, -1) / (D ** 0.5)
        p = jax.nn.softmax(w, axis=-1)
        o = p @ v
        return o.transpose(0, 2, 1, 3).reshape(B, Sq, D)

    x1n = ln(x, params["g1"], params["b1"])
    x1 = attn(x1n, x1n, x1n, *params["self"]) + x
    x2n = ln(x1, params["g2"], params["b2"])
    x2 = attn(x2n, memory, memory, *params["cross"]) + x1
    x3 = ln(x2, params["g3"], params["b3"])
    return x3  # FFN output discarded by the reference forward


# ---------------------------------- main ------------------------------------ #

if __name__ == "__main__":
    B, S, Sm, D, H = 2, 8, 8, 32, 4  # feed_dim would be 64, but the FFN is dead code

    key = jax.random.PRNGKey(0)
    ks = jax.random.split(key, 24)

    x = jax.random.normal(ks[0], (B, S, D), jnp.float32)
    memory = jax.random.normal(ks[1], (B, Sm, D), jnp.float32)

    def lin(kw, kb):
        W = 0.05 * jax.random.normal(kw, (D, D), jnp.float32)   # PyTorch (out, in)
        b = 0.05 * jax.random.normal(kb, (D,), jnp.float32)
        return W, b

    Wq1, bq1 = lin(ks[2], ks[3]); Wk1, bk1 = lin(ks[4], ks[5]); Wv1, bv1 = lin(ks[6], ks[7])
    Wq2, bq2 = lin(ks[8], ks[9]); Wk2, bk2 = lin(ks[10], ks[11]); Wv2, bv2 = lin(ks[12], ks[13])

    g1 = 1.0 + 0.1 * jax.random.normal(ks[14], (D,), jnp.float32)
    b1 = 0.1 * jax.random.normal(ks[15], (D,), jnp.float32)
    g2 = 1.0 + 0.1 * jax.random.normal(ks[16], (D,), jnp.float32)
    b2 = 0.1 * jax.random.normal(ks[17], (D,), jnp.float32)
    g3 = 1.0 + 0.1 * jax.random.normal(ks[18], (D,), jnp.float32)
    b3 = 0.1 * jax.random.normal(ks[19], (D,), jnp.float32)

    # Pack parameters for the kernel: weights pre-transposed to (in, out), fused
    # along the output axis, and the 1/sqrt(d_model) softmax scale folded into
    # the Q weights/biases (one-time host-side repack -> genuinely free).
    scale = 1.0 / (D ** 0.5)
    ln_g = jnp.stack([g1, g2, g3]).reshape(3, 1, D)
    ln_b = jnp.stack([b1, b2, b3]).reshape(3, 1, D)
    w_self = jnp.concatenate([Wq1.T * scale, Wk1.T, Wv1.T], axis=1)          # (D, 3D)
    b_self = jnp.concatenate([bq1 * scale, bk1, bv1]).reshape(1, 3 * D)      # (1, 3D)
    w_cq = Wq2.T * scale                                                     # (D, D)
    b_cq = (bq2 * scale).reshape(1, D)                                       # (1, D)
    w_ckv = jnp.concatenate([Wk2.T, Wv2.T], axis=1)                          # (D, 2D)
    b_ckv = jnp.concatenate([bk2, bv2]).reshape(1, 2 * D)                    # (1, 2D)

    params = dict(g1=g1, b1=b1, g2=g2, b2=b2, g3=g3, b3=b3,
                  self=(Wq1, bq1, Wk1, bk1, Wv1, bv1),
                  cross=(Wq2, bq2, Wk2, bk2, Wv2, bv2))
    ref = _reference(x, memory, params, H)

    # Default path: batch folded into a single grid step (single-TC v5e/v6e).
    out = decoder_layer_pallas(x, memory, ln_g, ln_b,
                               w_self, b_self, w_cq, b_cq, w_ckv, b_ckv, H)
    out = jax.block_until_ready(out)
    assert out.shape == (B, S, D)
    assert jnp.max(jnp.abs(out - ref)) < 1e-4, float(jnp.max(jnp.abs(out - ref)))

    # v7x-style path: batch split across TensorCores via a "parallel" grid axis.
    out_grid = decoder_layer_pallas(x, memory, ln_g, ln_b,
                                    w_self, b_self, w_cq, b_cq, w_ckv, b_ckv, H,
                                    grid_over_batch=True)
    out_grid = jax.block_until_ready(out_grid)
    assert jnp.max(jnp.abs(out_grid - ref)) < 1e-4, float(jnp.max(jnp.abs(out_grid - ref)))

    print("KERNEL_OK")
</pallas_src>

<mosaic_0001>
module attributes {stable_mosaic.version = 11 : i64} {
  func.func @_decoder_layer_kernel(%arg0: i32, %arg1: memref<2x8x32xf32, #tpu.memory_space<vmem>>, %arg2: memref<2x8x32xf32, #tpu.memory_space<vmem>>, %arg3: memref<3x1x32xf32, #tpu.memory_space<vmem>>, %arg4: memref<3x1x32xf32, #tpu.memory_space<vmem>>, %arg5: memref<32x96xf32, #tpu.memory_space<vmem>>, %arg6: memref<1x96xf32, #tpu.memory_space<vmem>>, %arg7: memref<32x32xf32, #tpu.memory_space<vmem>>, %arg8: memref<1x32xf32, #tpu.memory_space<vmem>>, %arg9: memref<32x64xf32, #tpu.memory_space<vmem>>, %arg10: memref<1x64xf32, #tpu.memory_space<vmem>>, %arg11: memref<2x8x32xf32, #tpu.memory_space<vmem>>) attributes {dimension_semantics = [#tpu.dimension_semantics<arbitrary>], iteration_bounds = array<i64: 1>, scalar_prefetch = 0 : i64, scratch_operands = 0 : i64, tpu.core_type = #tpu.core_type<tc>, window_params = [{pipeline_mode = #tpu.pipeline_mode<synchronous>, transform_indices = @transform_0, window_bounds = array<i64: 2, 8, 32>}, {pipeline_mode = #tpu.pipeline_mode<synchronous>, transform_indices = @transform_1, window_bounds = array<i64: 2, 8, 32>}, {pipeline_mode = #tpu.pipeline_mode<synchronous>, transform_indices = @transform_2, window_bounds = array<i64: 3, 1, 32>}, {pipeline_mode = #tpu.pipeline_mode<synchronous>, transform_indices = @transform_3, window_bounds = array<i64: 3, 1, 32>}, {pipeline_mode = #tpu.pipeline_mode<synchronous>, transform_indices = @transform_4, window_bounds = array<i64: 32, 96>}, {pipeline_mode = #tpu.pipeline_mode<synchronous>, transform_indices = @transform_5, window_bounds = array<i64: 1, 96>}, {pipeline_mode = #tpu.pipeline_mode<synchronous>, transform_indices = @transform_6, window_bounds = array<i64: 32, 32>}, {pipeline_mode = #tpu.pipeline_mode<synchronous>, transform_indices = @transform_7, window_bounds = array<i64: 1, 32>}, {pipeline_mode = #tpu.pipeline_mode<synchronous>, transform_indices = @transform_8, window_bounds = array<i64: 32, 64>}, {pipeline_mode = #tpu.pipeline_mode<synchronous>, transform_indices = @transform_9, window_bounds = array<i64: 1, 64>}, {pipeline_mode = #tpu.pipeline_mode<synchronous>, transform_indices = @transform_10, window_bounds = array<i64: 2, 8, 32>}]} {
    %c0 = arith.constant 0 : index
    %c0_0 = arith.constant 0 : index
    %c0_1 = arith.constant 0 : index
    %0 = vector.load %arg1[%c0, %c0_0, %c0_1] : memref<2x8x32xf32, #tpu.memory_space<vmem>>, vector<2x8x32xf32>
    %1 = vector.shape_cast %0 : vector<2x8x32xf32> to vector<16x32xf32>
    %c0_2 = arith.constant 0 : index
    %c0_3 = arith.constant 0 : index
    %c0_4 = arith.constant 0 : index
    %2 = vector.load %arg2[%c0_2, %c0_3, %c0_4] : memref<2x8x32xf32, #tpu.memory_space<vmem>>, vector<2x8x32xf32>
    %3 = vector.shape_cast %2 : vector<2x8x32xf32> to vector<16x32xf32>
    %c0_5 = arith.constant 0 : index
    %c0_6 = arith.constant 0 : index
    %4 = vector.load %arg9[%c0_5, %c0_6] : memref<32x64xf32, #tpu.memory_space<vmem>>, vector<32x64xf32>
    %cst = arith.constant dense<0.000000e+00> : vector<16x64xf32>
    %5 = tpu.matmul %3, %4, %cst {dimension_numbers = #tpu.dot_dimension_numbers<[1], [0], [0], [1], [0, 0, 1, 1], [], []>} : vector<16x32xf32>, vector<32x64xf32>, vector<16x64xf32> -> vector<16x64xf32>
    %c0_7 = arith.constant 0 : index
    %c0_8 = arith.constant 0 : index
    %6 = vector.load %arg10[%c0_7, %c0_8] : memref<1x64xf32, #tpu.memory_space<vmem>>, vector<1x64xf32>
    %7 = vector.broadcast %6 : vector<1x64xf32> to vector<16x64xf32>
    %8 = arith.addf %5, %7 : vector<16x64xf32>
    %c0_9 = arith.constant 0 : index
    %c0_10 = arith.constant 0 : index
    %c0_11 = arith.constant 0 : index
    %9 = vector.load %arg3[%c0_9, %c0_10, %c0_11] : memref<3x1x32xf32, #tpu.memory_space<vmem>>, vector<1x1x32xf32>
    %10 = vector.shape_cast %9 : vector<1x1x32xf32> to vector<1x32xf32>
    %c0_12 = arith.constant 0 : index
    %c0_13 = arith.constant 0 : index
    %c0_14 = arith.constant 0 : index
    %11 = vector.load %arg4[%c0_12, %c0_13, %c0_14] : memref<3x1x32xf32, #tpu.memory_space<vmem>>, vector<1x1x32xf32>
    %12 = vector.shape_cast %11 : vector<1x1x32xf32> to vector<1x32xf32>
    %cst_15 = arith.constant dense<0.000000e+00> : vector<16xf32>
    %13 = vector.multi_reduction <add>, %1, %cst_15 [1] : vector<16x32xf32> to vector<16xf32>
    %14 = vector.shape_cast %13 : vector<16xf32> to vector<16x1xf32>
    %cst_16 = arith.constant 3.200000e+01 : f32
    %15 = vector.broadcast %cst_16 : f32 to vector<16x1xf32>
    %16 = arith.divf %14, %15 : vector<16x1xf32>
    %17 = arith.mulf %1, %1 : vector<16x32xf32>
    %cst_17 = arith.constant dense<0.000000e+00> : vector<16xf32>
    %18 = vector.multi_reduction <add>, %17, %cst_17 [1] : vector<16x32xf32> to vector<16xf32>
    %19 = vector.shape_cast %18 : vector<16xf32> to vector<16x1xf32>
    %cst_18 = arith.constant 3.200000e+01 : f32
    %20 = vector.broadcast %cst_18 : f32 to vector<16x1xf32>
    %21 = arith.divf %19, %20 : vector<16x1xf32>
    %22 = arith.mulf %16, %16 : vector<16x1xf32>
    %23 = arith.subf %21, %22 : vector<16x1xf32>
    %24 = vector.broadcast %16 : vector<16x1xf32> to vector<16x32xf32>
    %25 = arith.subf %1, %24 : vector<16x32xf32>
    %cst_19 = arith.constant 9.99999974E-6 : f32
    %26 = vector.broadcast %cst_19 : f32 to vector<16x1xf32>
    %27 = arith.addf %23, %26 : vector<16x1xf32>
    %28 = math.rsqrt %27 : vector<16x1xf32>
    %29 = vector.broadcast %28 : vector<16x1xf32> to vector<16x32xf32>
    %30 = arith.mulf %25, %29 : vector<16x32xf32>
    %31 = vector.broadcast %10 : vector<1x32xf32> to vector<16x32xf32>
    %32 = arith.mulf %30, %31 : vector<16x32xf32>
    %33 = vector.broadcast %12 : vector<1x32xf32> to vector<16x32xf32>
    %34 = arith.addf %32, %33 : vector<16x32xf32>
    %c0_20 = arith.constant 0 : index
    %c0_21 = arith.constant 0 : index
    %35 = vector.load %arg5[%c0_20, %c0_21] : memref<32x96xf32, #tpu.memory_space<vmem>>, vector<32x96xf32>
    %cst_22 = arith.constant dense<0.000000e+00> : vector<16x96xf32>
    %36 = tpu.matmul %34, %35, %cst_22 {dimension_numbers = #tpu.dot_dimension_numbers<[1], [0], [0], [1], [0, 0, 1, 1], [], []>} : vector<16x32xf32>, vector<32x96xf32>, vector<16x96xf32> -> vector<16x96xf32>
    %c0_23 = arith.constant 0 : index
    %c0_24 = arith.constant 0 : index
    %37 = vector.load %arg6[%c0_23, %c0_24] : memref<1x96xf32, #tpu.memory_space<vmem>>, vector<1x96xf32>
    %38 = vector.broadcast %37 : vector<1x96xf32> to vector<16x96xf32>
    %39 = arith.addf %36, %38 : vector<16x96xf32>
    %40 = vector.extract_strided_slice %39 {offsets = [0, 0], sizes = [8, 96], strides = [1, 1]} : vector<16x96xf32> to vector<8x96xf32>
    %41 = tpu.transpose %40, [1, 0] : vector<8x96xf32> -> vector<96x8xf32>
    %42 = vector.extract_strided_slice %41 {offsets = [0, 0], sizes = [32, 8], strides = [1, 1]} : vector<96x8xf32> to vector<32x8xf32>
    %43 = vector.extract_strided_slice %41 {offsets = [32, 0], sizes = [32, 8], strides = [1, 1]} : vector<96x8xf32> to vector<32x8xf32>
    %44 = vector.extract_strided_slice %41 {offsets = [64, 0], sizes = [32, 8], strides = [1, 1]} : vector<96x8xf32> to vector<32x8xf32>
    %45 = vector.shape_cast %42 : vector<32x8xf32> to vector<4x8x8xf32>
    %46 = tpu.transpose %45, [0, 2, 1] : vector<4x8x8xf32> -> vector<4x8x8xf32>
    %47 = vector.shape_cast %43 : vector<32x8xf32> to vector<4x8x8xf32>
    %48 = vector.shape_cast %44 : vector<32x8xf32> to vector<4x8x8xf32>
    "tpu.trace_start"() <{level = 10 : i32, message = "hqd,hds->hqs"}> : () -> ()
    %cst_25 = arith.constant dense<0.000000e+00> : vector<4x8x8xf32>
    %49 = tpu.matmul %46, %47, %cst_25 {dimension_numbers = #tpu.dot_dimension_numbers<[2], [1], [1], [2], [0, 0, 0, 1, 1, 2], [0], [0]>} : vector<4x8x8xf32>, vector<4x8x8xf32>, vector<4x8x8xf32> -> vector<4x8x8xf32>
    "tpu.trace_stop"() : () -> ()
    %cst_26 = arith.constant dense<0xFF800000> : vector<4x8xf32>
    %50 = vector.multi_reduction <maximumf>, %49, %cst_26 [2] : vector<4x8x8xf32> to vector<4x8xf32>
    %51 = vector.shape_cast %50 : vector<4x8xf32> to vector<4x8x1xf32>
    %52 = vector.broadcast %51 : vector<4x8x1xf32> to vector<4x8x8xf32>
    %53 = arith.subf %49, %52 : vector<4x8x8xf32>
    %54 = math.exp %53 : vector<4x8x8xf32>
    %cst_27 = arith.constant dense<0.000000e+00> : vector<4x8xf32>
    %55 = vector.multi_reduction <add>, %54, %cst_27 [2] : vector<4x8x8xf32> to vector<4x8xf32>
    %56 = vector.shape_cast %55 : vector<4x8xf32> to vector<4x8x1xf32>
    %57 = tpu.reciprocal %56 : vector<4x8x1xf32> -> vector<4x8x1xf32>
    %58 = vector.broadcast %57 : vector<4x8x1xf32> to vector<4x8x8xf32>
    %59 = arith.mulf %54, %58 : vector<4x8x8xf32>
    "tpu.trace_start"() <{level = 10 : i32, message = "hds,hqs->hdq"}> : () -> ()
    %cst_28 = arith.constant dense<0.000000e+00> : vector<4x8x8xf32>
    %60 = tpu.matmul %48, %59, %cst_28 {dimension_numbers = #tpu.dot_dimension_numbers<[2], [2], [1], [1], [0, 0, 0, 1, 1, 1], [0], [0]>} : vector<4x8x8xf32>, vector<4x8x8xf32>, vector<4x8x8xf32> -> vector<4x8x8xf32>
    "tpu.trace_stop"() : () -> ()
    %61 = vector.shape_cast %60 : vector<4x8x8xf32> to vector<32x8xf32>
    %62 = tpu.transpose %61, [1, 0] : vector<32x8xf32> -> vector<8x32xf32>
    %63 = vector.extract_strided_slice %39 {offsets = [8, 0], sizes = [8, 96], strides = [1, 1]} : vector<16x96xf32> to vector<8x96xf32>
    %64 = tpu.transpose %63, [1, 0] : vector<8x96xf32> -> vector<96x8xf32>
    %65 = vector.extract_strided_slice %64 {offsets = [0, 0], sizes = [32, 8], strides = [1, 1]} : vector<96x8xf32> to vector<32x8xf32>
    %66 = vector.extract_strided_slice %64 {offsets = [32, 0], sizes = [32, 8], strides = [1, 1]} : vector<96x8xf32> to vector<32x8xf32>
    %67 = vector.extract_strided_slice %64 {offsets = [64, 0], sizes = [32, 8], strides = [1, 1]} : vector<96x8xf32> to vector<32x8xf32>
    %68 = vector.shape_cast %65 : vector<32x8xf32> to vector<4x8x8xf32>
    %69 = tpu.transpose %68, [0, 2, 1] : vector<4x8x8xf32> -> vector<4x8x8xf32>
    %70 = vector.shape_cast %66 : vector<32x8xf32> to vector<4x8x8xf32>
    %71 = vector.shape_cast %67 : vector<32x8xf32> to vector<4x8x8xf32>
    "tpu.trace_start"() <{level = 10 : i32, message = "hqd,hds->hqs"}> : () -> ()
    %cst_29 = arith.constant dense<0.000000e+00> : vector<4x8x8xf32>
    %72 = tpu.matmul %69, %70, %cst_29 {dimension_numbers = #tpu.dot_dimension_numbers<[2], [1], [1], [2], [0, 0, 0, 1, 1, 2], [0], [0]>} : vector<4x8x8xf32>, vector<4x8x8xf32>, vector<4x8x8xf32> -> vector<4x8x8xf32>
    "tpu.trace_stop"() : () -> ()
    %cst_30 = arith.constant dense<0xFF800000> : vector<4x8xf32>
    %73 = vector.multi_reduction <maximumf>, %72, %cst_30 [2] : vector<4x8x8xf32> to vector<4x8xf32>
    %74 = vector.shape_cast %73 : vector<4x8xf32> to vector<4x8x1xf32>
    %75 = vector.broadcast %74 : vector<4x8x1xf32> to vector<4x8x8xf32>
    %76 = arith.subf %72, %75 : vector<4x8x8xf32>
    %77 = math.exp %76 : vector<4x8x8xf32>
    %cst_31 = arith.constant dense<0.000000e+00> : vector<4x8xf32>
    %78 = vector.multi_reduction <add>, %77, %cst_31 [2] : vector<4x8x8xf32> to vector<4x8xf32>
    %79 = vector.shape_cast %78 : vector<4x8xf32> to vector<4x8x1xf32>
    %80 = tpu.reciprocal %79 : vector<4x8x1xf32> -> vector<4x8x1xf32>
    %81 = vector.broadcast %80 : vector<4x8x1xf32> to vector<4x8x8xf32>
    %82 = arith.mulf %77, %81 : vector<4x8x8xf32>
    "tpu.trace_start"() <{level = 10 : i32, message = "hds,hqs->hdq"}> : () -> ()
    %cst_32 = arith.constant dense<0.000000e+00> : vector<4x8x8xf32>
    %83 = tpu.matmul %71, %82, %cst_32 {dimension_numbers = #tpu.dot_dimension_numbers<[2], [2], [1], [1], [0, 0, 0, 1, 1, 1], [0], [0]>} : vector<4x8x8xf32>, vector<4x8x8xf32>, vector<4x8x8xf32> -> vector<4x8x8xf32>
    "tpu.trace_stop"() : () -> ()
    %84 = vector.shape_cast %83 : vector<4x8x8xf32> to vector<32x8xf32>
    %85 = tpu.transpose %84, [1, 0] : vector<32x8xf32> -> vector<8x32xf32>
    %86 = tpu.concatenate %62, %85 in 0 : vector<8x32xf32>, vector<8x32xf32> -> vector<16x32xf32>
    %87 = arith.addf %86, %1 : vector<16x32xf32>
    %c1 = arith.constant 1 : index
    %c0_33 = arith.constant 0 : index
    %c0_34 = arith.constant 0 : index
    %88 = vector.load %arg3[%c1, %c0_33, %c0_34] : memref<3x1x32xf32, #tpu.memory_space<vmem>>, vector<1x1x32xf32>
    %89 = vector.shape_cast %88 : vector<1x1x32xf32> to vector<1x32xf32>
    %c1_35 = arith.constant 1 : index
    %c0_36 = arith.constant 0 : index
    %c0_37 = arith.constant 0 : index
    %90 = vector.load %arg4[%c1_35, %c0_36, %c0_37] : memref<3x1x32xf32, #tpu.memory_space<vmem>>, vector<1x1x32xf32>
    %91 = vector.shape_cast %90 : vector<1x1x32xf32> to vector<1x32xf32>
    %cst_38 = arith.constant dense<0.000000e+00> : vector<16xf32>
    %92 = vector.multi_reduction <add>, %87, %cst_38 [1] : vector<16x32xf32> to vector<16xf32>
    %93 = vector.shape_cast %92 : vector<16xf32> to vector<16x1xf32>
    %cst_39 = arith.constant 3.200000e+01 : f32
    %94 = vector.broadcast %cst_39 : f32 to vector<16x1xf32>
    %95 = arith.divf %93, %94 : vector<16x1xf32>
    %96 = arith.mulf %87, %87 : vector<16x32xf32>
    %cst_40 = arith.constant dense<0.000000e+00> : vector<16xf32>
    %97 = vector.multi_reduction <add>, %96, %cst_40 [1] : vector<16x32xf32> to vector<16xf32>
    %98 = vector.shape_cast %97 : vector<16xf32> to vector<16x1xf32>
    %cst_41 = arith.constant 3.200000e+01 : f32
    %99 = vector.broadcast %cst_41 : f32 to vector<16x1xf32>
    %100 = arith.divf %98, %99 : vector<16x1xf32>
    %101 = arith.mulf %95, %95 : vector<16x1xf32>
    %102 = arith.subf %100, %101 : vector<16x1xf32>
    %103 = vector.broadcast %95 : vector<16x1xf32> to vector<16x32xf32>
    %104 = arith.subf %87, %103 : vector<16x32xf32>
    %cst_42 = arith.constant 9.99999974E-6 : f32
    %105 = vector.broadcast %cst_42 : f32 to vector<16x1xf32>
    %106 = arith.addf %102, %105 : vector<16x1xf32>
    %107 = math.rsqrt %106 : vector<16x1xf32>
    %108 = vector.broadcast %107 : vector<16x1xf32> to vector<16x32xf32>
    %109 = arith.mulf %104, %108 : vector<16x32xf32>
    %110 = vector.broadcast %89 : vector<1x32xf32> to vector<16x32xf32>
    %111 = arith.mulf %109, %110 : vector<16x32xf32>
    %112 = vector.broadcast %91 : vector<1x32xf32> to vector<16x32xf32>
    %113 = arith.addf %111, %112 : vector<16x32xf32>
    %c0_43 = arith.constant 0 : index
    %c0_44 = arith.constant 0 : index
    %114 = vector.load %arg7[%c0_43, %c0_44] : memref<32x32xf32, #tpu.memory_space<vmem>>, vector<32x32xf32>
    %cst_45 = arith.constant dense<0.000000e+00> : vector<16x32xf32>
    %115 = tpu.matmul %113, %114, %cst_45 {dimension_numbers = #tpu.dot_dimension_numbers<[1], [0], [0], [1], [0, 0, 1, 1], [], []>} : vector<16x32xf32>, vector<32x32xf32>, vector<16x32xf32> -> vector<16x32xf32>
    %c0_46 = arith.constant 0 : index
    %c0_47 = arith.constant 0 : index
    %116 = vector.load %arg8[%c0_46, %c0_47] : memref<1x32xf32, #tpu.memory_space<vmem>>, vector<1x32xf32>
    %117 = vector.broadcast %116 : vector<1x32xf32> to vector<16x32xf32>
    %118 = arith.addf %115, %117 : vector<16x32xf32>
    %119 = vector.extract_strided_slice %118 {offsets = [0, 0], sizes = [8, 32], strides = [1, 1]} : vector<16x32xf32> to vector<8x32xf32>
    %120 = tpu.transpose %119, [1, 0] : vector<8x32xf32> -> vector<32x8xf32>
    %121 = vector.extract_strided_slice %8 {offsets = [0, 0], sizes = [8, 64], strides = [1, 1]} : vector<16x64xf32> to vector<8x64xf32>
    %122 = tpu.transpose %121, [1, 0] : vector<8x64xf32> -> vector<64x8xf32>
    %123 = vector.extract_strided_slice %122 {offsets = [0, 0], sizes = [32, 8], strides = [1, 1]} : vector<64x8xf32> to vector<32x8xf32>
    %124 = vector.extract_strided_slice %122 {offsets = [32, 0], sizes = [32, 8], strides = [1, 1]} : vector<64x8xf32> to vector<32x8xf32>
    %125 = vector.shape_cast %120 : vector<32x8xf32> to vector<4x8x8xf32>
    %126 = tpu.transpose %125, [0, 2, 1] : vector<4x8x8xf32> -> vector<4x8x8xf32>
    %127 = vector.shape_cast %123 : vector<32x8xf32> to vector<4x8x8xf32>
    %128 = vector.shape_cast %124 : vector<32x8xf32> to vector<4x8x8xf32>
    "tpu.trace_start"() <{level = 10 : i32, message = "hqd,hds->hqs"}> : () -> ()
    %cst_48 = arith.constant dense<0.000000e+00> : vector<4x8x8xf32>
    %129 = tpu.matmul %126, %127, %cst_48 {dimension_numbers = #tpu.dot_dimension_numbers<[2], [1], [1], [2], [0, 0, 0, 1, 1, 2], [0], [0]>} : vector<4x8x8xf32>, vector<4x8x8xf32>, vector<4x8x8xf32> -> vector<4x8x8xf32>
    "tpu.trace_stop"() : () -> ()
    %cst_49 = arith.constant dense<0xFF800000> : vector<4x8xf32>
    %130 = vector.multi_reduction <maximumf>, %129, %cst_49 [2] : vector<4x8x8xf32> to vector<4x8xf32>
    %131 = vector.shape_cast %130 : vector<4x8xf32> to vector<4x8x1xf32>
    %132 = vector.broadcast %131 : vector<4x8x1xf32> to vector<4x8x8xf32>
    %133 = arith.subf %129, %132 : vector<4x8x8xf32>
    %134 = math.exp %133 : vector<4x8x8xf32>
    %cst_50 = arith.constant dense<0.000000e+00> : vector<4x8xf32>
    %135 = vector.multi_reduction <add>, %134, %cst_50 [2] : vector<4x8x8xf32> to vector<4x8xf32>
    %136 = vector.shape_cast %135 : vector<4x8xf32> to vector<4x8x1xf32>
    %137 = tpu.reciprocal %136 : vector<4x8x1xf32> -> vector<4x8x1xf32>
    %138 = vector.broadcast %137 : vector<4x8x1xf32> to vector<4x8x8xf32>
    %139 = arith.mulf %134, %138 : vector<4x8x8xf32>
    "tpu.trace_start"() <{level = 10 : i32, message = "hds,hqs->hdq"}> : () -> ()
    %cst_51 = arith.constant dense<0.000000e+00> : vector<4x8x8xf32>
    %140 = tpu.matmul %128, %139, %cst_51 {dimension_numbers = #tpu.dot_dimension_numbers<[2], [2], [1], [1], [0, 0, 0, 1, 1, 1], [0], [0]>} : vector<4x8x8xf32>, vector<4x8x8xf32>, vector<4x8x8xf32> -> vector<4x8x8xf32>
    "tpu.trace_stop"() : () -> ()
    %141 = vector.shape_cast %140 : vector<4x8x8xf32> to vector<32x8xf32>
    %142 = tpu.transpose %141, [1, 0] : vector<32x8xf32> -> vector<8x32xf32>
    %143 = vector.extract_strided_slice %118 {offsets = [8, 0], sizes = [8, 32], strides = [1, 1]} : vector<16x32xf32> to vector<8x32xf32>
    %144 = tpu.transpose %143, [1, 0] : vector<8x32xf32> -> vector<32x8xf32>
    %145 = vector.extract_strided_slice %8 {offsets = [8, 0], sizes = [8, 64], strides = [1, 1]} : vector<16x64xf32> to vector<8x64xf32>
    %146 = tpu.transpose %145, [1, 0] : vector<8x64xf32> -> vector<64x8xf32>
    %147 = vector.extract_strided_slice %146 {offsets = [0, 0], sizes = [32, 8], strides = [1, 1]} : vector<64x8xf32> to vector<32x8xf32>
    %148 = vector.extract_strided_slice %146 {offsets = [32, 0], sizes = [32, 8], strides = [1, 1]} : vector<64x8xf32> to vector<32x8xf32>
    %149 = vector.shape_cast %144 : vector<32x8xf32> to vector<4x8x8xf32>
    %150 = tpu.transpose %149, [0, 2, 1] : vector<4x8x8xf32> -> vector<4x8x8xf32>
    %151 = vector.shape_cast %147 : vector<32x8xf32> to vector<4x8x8xf32>
    %152 = vector.shape_cast %148 : vector<32x8xf32> to vector<4x8x8xf32>
    "tpu.trace_start"() <{level = 10 : i32, message = "hqd,hds->hqs"}> : () -> ()
    %cst_52 = arith.constant dense<0.000000e+00> : vector<4x8x8xf32>
    %153 = tpu.matmul %150, %151, %cst_52 {dimension_numbers = #tpu.dot_dimension_numbers<[2], [1], [1], [2], [0, 0, 0, 1, 1, 2], [0], [0]>} : vector<4x8x8xf32>, vector<4x8x8xf32>, vector<4x8x8xf32> -> vector<4x8x8xf32>
    "tpu.trace_stop"() : () -> ()
    %cst_53 = arith.constant dense<0xFF800000> : vector<4x8xf32>
    %154 = vector.multi_reduction <maximumf>, %153, %cst_53 [2] : vector<4x8x8xf32> to vector<4x8xf32>
    %155 = vector.shape_cast %154 : vector<4x8xf32> to vector<4x8x1xf32>
    %156 = vector.broadcast %155 : vector<4x8x1xf32> to vector<4x8x8xf32>
    %157 = arith.subf %153, %156 : vector<4x8x8xf32>
    %158 = math.exp %157 : vector<4x8x8xf32>
    %cst_54 = arith.constant dense<0.000000e+00> : vector<4x8xf32>
    %159 = vector.multi_reduction <add>, %158, %cst_54 [2] : vector<4x8x8xf32> to vector<4x8xf32>
    %160 = vector.shape_cast %159 : vector<4x8xf32> to vector<4x8x1xf32>
    %161 = tpu.reciprocal %160 : vector<4x8x1xf32> -> vector<4x8x1xf32>
    %162 = vector.broadcast %161 : vector<4x8x1xf32> to vector<4x8x8xf32>
    %163 = arith.mulf %158, %162 : vector<4x8x8xf32>
    "tpu.trace_start"() <{level = 10 : i32, message = "hds,hqs->hdq"}> : () -> ()
    %cst_55 = arith.constant dense<0.000000e+00> : vector<4x8x8xf32>
    %164 = tpu.matmul %152, %163, %cst_55 {dimension_numbers = #tpu.dot_dimension_numbers<[2], [2], [1], [1], [0, 0, 0, 1, 1, 1], [0], [0]>} : vector<4x8x8xf32>, vector<4x8x8xf32>, vector<4x8x8xf32> -> vector<4x8x8xf32>
    "tpu.trace_stop"() : () -> ()
    %165 = vector.shape_cast %164 : vector<4x8x8xf32> to vector<32x8xf32>
    %166 = tpu.transpose %165, [1, 0] : vector<32x8xf32> -> vector<8x32xf32>
    %167 = tpu.concatenate %142, %166 in 0 : vector<8x32xf32>, vector<8x32xf32> -> vector<16x32xf32>
    %168 = arith.addf %167, %87 : vector<16x32xf32>
    %c2 = arith.constant 2 : index
    %c0_56 = arith.constant 0 : index
    %c0_57 = arith.constant 0 : index
    %169 = vector.load %arg3[%c2, %c0_56, %c0_57] : memref<3x1x32xf32, #tpu.memory_space<vmem>>, vector<1x1x32xf32>
    %170 = vector.shape_cast %169 : vector<1x1x32xf32> to vector<1x32xf32>
    %c2_58 = arith.constant 2 : index
    %c0_59 = arith.constant 0 : index
    %c0_60 = arith.constant 0 : index
    %171 = vector.load %arg4[%c2_58, %c0_59, %c0_60] : memref<3x1x32xf32, #tpu.memory_space<vmem>>, vector<1x1x32xf32>
    %172 = vector.shape_cast %171 : vector<1x1x32xf32> to vector<1x32xf32>
    %cst_61 = arith.constant dense<0.000000e+00> : vector<16xf32>
    %173 = vector.multi_reduction <add>, %168, %cst_61 [1] : vector<16x32xf32> to vector<16xf32>
    %174 = vector.shape_cast %173 : vector<16xf32> to vector<16x1xf32>
    %cst_62 = arith.constant 3.200000e+01 : f32
    %175 = vector.broadcast %cst_62 : f32 to vector<16x1xf32>
    %176 = arith.divf %174, %175 : vector<16x1xf32>
    %177 = arith.mulf %168, %168 : vector<16x32xf32>
    %cst_63 = arith.constant dense<0.000000e+00> : vector<16xf32>
    %178 = vector.multi_reduction <add>, %177, %cst_63 [1] : vector<16x32xf32> to vector<16xf32>
    %179 = vector.shape_cast %178 : vector<16xf32> to vector<16x1xf32>
    %cst_64 = arith.constant 3.200000e+01 : f32
    %180 = vector.broadcast %cst_64 : f32 to vector<16x1xf32>
    %181 = arith.divf %179, %180 : vector<16x1xf32>
    %182 = arith.mulf %176, %176 : vector<16x1xf32>
    %183 = arith.subf %181, %182 : vector<16x1xf32>
    %184 = vector.broadcast %176 : vector<16x1xf32> to vector<16x32xf32>
    %185 = arith.subf %168, %184 : vector<16x32xf32>
    %cst_65 = arith.constant 9.99999974E-6 : f32
    %186 = vector.broadcast %cst_65 : f32 to vector<16x1xf32>
    %187 = arith.addf %183, %186 : vector<16x1xf32>
    %188 = math.rsqrt %187 : vector<16x1xf32>
    %189 = vector.broadcast %188 : vector<16x1xf32> to vector<16x32xf32>
    %190 = arith.mulf %185, %189 : vector<16x32xf32>
    %191 = vector.broadcast %170 : vector<1x32xf32> to vector<16x32xf32>
    %192 = arith.mulf %190, %191 : vector<16x32xf32>
    %193 = vector.broadcast %172 : vector<1x32xf32> to vector<16x32xf32>
    %194 = arith.addf %192, %193 : vector<16x32xf32>
    %195 = vector.shape_cast %194 : vector<16x32xf32> to vector<2x8x32xf32>
    %c0_66 = arith.constant 0 : index
    %c0_67 = arith.constant 0 : index
    %c0_68 = arith.constant 0 : index
    %196 = vector.load %arg11[%c0_66, %c0_67, %c0_68] : memref<2x8x32xf32, #tpu.memory_space<vmem>>, vector<2x8x32xf32>
    tpu.vector_store %arg11[%c0_66, %c0_67, %c0_68], %195 {strides = array<i32>} : memref<2x8x32xf32, #tpu.memory_space<vmem>>, vector<2x8x32xf32>,
    return
  }
  func.func @transform_0(%arg0: i32) -> (i32, i32, i32) {
    %c0_i32 = arith.constant 0 : i32
    %c0_i32_0 = arith.constant 0 : i32
    %c0_i32_1 = arith.constant 0 : i32
    %c0_i32_2 = arith.constant 0 : i32
    return %c0_i32, %c0_i32_0, %c0_i32_1 : i32, i32, i32
  }
  func.func @transform_1(%arg0: i32) -> (i32, i32, i32) {
    %c0_i32 = arith.constant 0 : i32
    %c0_i32_0 = arith.constant 0 : i32
    %c0_i32_1 = arith.constant 0 : i32
    %c0_i32_2 = arith.constant 0 : i32
    return %c0_i32, %c0_i32_0, %c0_i32_1 : i32, i32, i32
  }
  func.func @transform_2(%arg0: i32) -> (i32, i32, i32) {
    %c0_i32 = arith.constant 0 : i32
    %c0_i32_0 = arith.constant 0 : i32
    %c0_i32_1 = arith.constant 0 : i32
    %c0_i32_2 = arith.constant 0 : i32
    return %c0_i32, %c0_i32_0, %c0_i32_1 : i32, i32, i32
  }
  func.func @transform_3(%arg0: i32) -> (i32, i32, i32) {
    %c0_i32 = arith.constant 0 : i32
    %c0_i32_0 = arith.constant 0 : i32
    %c0_i32_1 = arith.constant 0 : i32
    %c0_i32_2 = arith.constant 0 : i32
    return %c0_i32, %c0_i32_0, %c0_i32_1 : i32, i32, i32
  }
  func.func @transform_4(%arg0: i32) -> (i32, i32) {
    %c0_i32 = arith.constant 0 : i32
    %c0_i32_0 = arith.constant 0 : i32
    %c0_i32_1 = arith.constant 0 : i32
    return %c0_i32, %c0_i32_0 : i32, i32
  }
  func.func @transform_5(%arg0: i32) -> (i32, i32) {
    %c0_i32 = arith.constant 0 : i32
    %c0_i32_0 = arith.constant 0 : i32
    %c0_i32_1 = arith.constant 0 : i32
    return %c0_i32, %c0_i32_0 : i32, i32
  }
  func.func @transform_6(%arg0: i32) -> (i32, i32) {
    %c0_i32 = arith.constant 0 : i32
    %c0_i32_0 = arith.constant 0 : i32
    %c0_i32_1 = arith.constant 0 : i32
    return %c0_i32, %c0_i32_0 : i32, i32
  }
  func.func @transform_7(%arg0: i32) -> (i32, i32) {
    %c0_i32 = arith.constant 0 : i32
    %c0_i32_0 = arith.constant 0 : i32
    %c0_i32_1 = arith.constant 0 : i32
    return %c0_i32, %c0_i32_0 : i32, i32
  }
  func.func @transform_8(%arg0: i32) -> (i32, i32) {
    %c0_i32 = arith.constant 0 : i32
    %c0_i32_0 = arith.constant 0 : i32
    %c0_i32_1 = arith.constant 0 : i32
    return %c0_i32, %c0_i32_0 : i32, i32
  }
  func.func @transform_9(%arg0: i32) -> (i32, i32) {
    %c0_i32 = arith.constant 0 : i32
    %c0_i32_0 = arith.constant 0 : i32
    %c0_i32_1 = arith.constant 0 : i32
    return %c0_i32, %c0_i32_0 : i32, i32
  }
  func.func @transform_10(%arg0: i32) -> (i32, i32, i32) {
    %c0_i32 = arith.constant 0 : i32
    %c0_i32_0 = arith.constant 0 : i32
    %c0_i32_1 = arith.constant 0 : i32
    %c0_i32_2 = arith.constant 0 : i32
    return %c0_i32, %c0_i32_0, %c0_i32_1 : i32, i32, i32
  }
}

</mosaic_0001>

<bundles_post_ra>
// kernel: tpu_custom_call.1
= control target key start
LH: loop header
LB: loop body
LE: loop exit
PB: predicated region body
PF: predicated region fallthrough
CT: control target
= control target key end

     0   :  { %15 = vsyncpa [#allocation3], 0  ;;  %s5028_s0 = inlined_call_operand.hbm [shape: f32[2,8,32], index: 0, kind: input, shape index: {}]   ;;  %s5029_s1 = inlined_call_operand.hbm [shape: f32[2,8,32], index: 1, kind: input, shape index: {}]   ;;  %s5030_s2 = inlined_call_operand.vmem [shape: f32[3,1,32], index: 2, kind: input, shape index: {}]   ;;  %s5031_s3 = inlined_call_operand.vmem [shape: f32[3,1,32], index: 3, kind: input, shape index: {}]   ;;  %s5032_s4 = inlined_call_operand.hbm [shape: f32[32,96], index: 4, kind: input, shape index: {}]   ;;  %s5033_s5 = inlined_call_operand.vmem [shape: f32[1,96], index: 5, kind: input, shape index: {}]   ;;  %s5034_s6 = inlined_call_operand.hbm [shape: f32[32,32], index: 6, kind: input, shape index: {}]   ;;  %s5035_s7 = inlined_call_operand.vmem [shape: f32[1,32], index: 7, kind: input, shape index: {}]   ;;  %s5036_s8 = inlined_call_operand.hbm [shape: f32[32,64], index: 8, kind: input, shape index: {}]   ;;  %s5037_s9 = inlined_call_operand.vmem [shape: f32[1,64], index: 9, kind: input, shape index: {}]   ;;  %s5038_s10 = inlined_call_operand.hbm [shape: f32[2,8,32], index: 10, kind: output, shape index: {}]  }
   0x1   :  { %16 = vsyncpa [#allocation6], 0 }
   0x2   :  { %17 = vsyncpa [#allocation9], 0 }
   0x3   :  { %18 = vsyncpa [#allocation4], 0  ;;  %s4544_s13 = smov [#allocation5]   ;;  %s4545_s15 = smov [#allocation8]  }
   0x4   :  { %s36_s14 = sshll.u32 %s4544_s13, 4  ;;  %s66_s16 = sshll.u32 %s4545_s15, 4  ;;  %s37_s14 = int_to_ptr.vmem [resolvable:$true] %s36_s14  ;;  %s4609_s16 = int_to_ptr.vmem [resolvable:$true] %s66_s16 }
   0x5   :  { %s4404_s19 = scalar_lea.hbm %s5029_s1, 256 }
   0x6   :  { %p4405_p0 = scmp.ne.s32.totalorder %s5029_s1, %s4404_s19  ;;  %p4408_p1 = scmp.lt.u32.totalorder %s4404_s19, %s5029_s1 }
   0x8   :  { %p4410_p2 = pnand %p4408_p1, %p4405_p0 }
   0xa   :  { %4413 = shalt.err (!%p4410_p2)
}
   0xb   :  { %s4414_s24 = scalar_lea.vmem %s37_s14, 256  ;;  %p4419_p4 = scmp.lt.s32.totalorder %s37_s14, %s37_s14 }
   0xc   :  { %p4415_p3 = scmp.ne.s32.totalorder %s37_s14, %s4414_s24  ;;  %p4420_p5 = scmp.lt.s32.totalorder %s4414_s24, %s4414_s24 }
   0xe   :  { %p4421_p6 = por %p4420_p5, %p4419_p4 }
  0x10   :  { %p4422_p7 = pnand %p4421_p6, %p4415_p3 }
  0x12   :  { %4425 = shalt.err (!%p4422_p7)
}
  0x13   :  { %s4546_s25 = smov 128   ;;  %s4547_s26 = smov 8  }
  0x14   :  { %42 = dma.hbm_to_vmem [thread:$0]  %s5029_s1, 256, %s37_s14, [#allocation6], %s4546_s25, %s4546_s25, %s4547_s26  }
  0x15   :  { %s4426_s11 = scalar_lea.hbm %s5034_s6, 512 }
  0x16   :  { %p4427_p8 = scmp.ne.s32.totalorder %s5034_s6, %s4426_s11  ;;  %p4430_p9 = scmp.lt.u32.totalorder %s4426_s11, %s5034_s6 }
  0x18   :  { %p4432_p10 = pnand %p4430_p9, %p4427_p8 }
  0x1a   :  { %4435 = shalt.err (!%p4432_p10)
}
  0x1b   :  { %s4436_s18 = scalar_lea.vmem %s4609_s16, 512  ;;  %p4441_p12 = scmp.lt.s32.totalorder %s4609_s16, %s4609_s16 }
  0x1c   :  { %p4437_p11 = scmp.ne.s32.totalorder %s4609_s16, %s4436_s18  ;;  %p4442_p13 = scmp.lt.s32.totalorder %s4436_s18, %s4436_s18 }
  0x1e   :  { %p4443_p0 = por %p4442_p13, %p4441_p12 }
  0x20   :  { %p4444_p1 = pnand %p4443_p0, %p4437_p11 }
  0x22   :  { %4447 = shalt.err (!%p4444_p1)
}
  0x23   :  { %72 = dma.hbm_to_vmem [thread:$0]  %s5034_s6, 512, %s4609_s16, [#allocation9], %s4546_s25, %s4546_s25, %s4547_s26  }
  0x24   :  { %s4548_s19 = smov [#allocation2]   ;;  %s4549_s21 = smov [#allocation7]  }
  0x25   :  { %s24_s20 = sshll.u32 %s4548_s19, 4  ;;  %s52_s22 = sshll.u32 %s4549_s21, 4  ;;  %s25_s20 = int_to_ptr.vmem [resolvable:$true] %s24_s20  ;;  %s4646_s22 = int_to_ptr.vmem [resolvable:$true] %s52_s22 }
  0x26   :  { %s4448_s27 = scalar_lea.hbm %s5028_s0, 256 }
  0x27   :  { %p4449_p2 = scmp.ne.s32.totalorder %s5028_s0, %s4448_s27  ;;  %p4452_p3 = scmp.lt.u32.totalorder %s4448_s27, %s5028_s0 }
  0x29   :  { %p4454_p4 = pnand %p4452_p3, %p4449_p2 }
  0x2b   :  { %4457 = shalt.err (!%p4454_p4)
}
  0x2c   :  { %s4458_s6 = scalar_lea.vmem %s25_s20, 256  ;;  %p4463_p6 = scmp.lt.s32.totalorder %s25_s20, %s25_s20 }
  0x2d   :  { %p4459_p5 = scmp.ne.s32.totalorder %s25_s20, %s4458_s6  ;;  %p4464_p7 = scmp.lt.s32.totalorder %s4458_s6, %s4458_s6 }
  0x2f   :  { %p4465_p8 = por %p4464_p7, %p4463_p6 }
  0x31   :  { %p4466_p9 = pnand %p4465_p8, %p4459_p5 }
  0x33   :  { %4469 = shalt.err (!%p4466_p9)
}
  0x34   :  { %30 = dma.hbm_to_vmem [thread:$0]  %s5028_s0, 256, %s25_s20, [#allocation3], %s4546_s25, %s4546_s25, %s4547_s26  }
  0x35   :  { %s4470_s17 = scalar_lea.hbm %s5032_s4, 512 }
  0x36   :  { %p4471_p10 = scmp.ne.s32.totalorder %s5032_s4, %s4470_s17  ;;  %p4474_p11 = scmp.lt.u32.totalorder %s4470_s17, %s5032_s4 }
  0x38   :  { %p4476_p12 = pnand %p4474_p11, %p4471_p10 }
  0x3a   :  { %4479 = shalt.err (!%p4476_p12)
}
  0x3b   :  { %s4480_s21 = scalar_lea.vmem %s4646_s22, 512  ;;  %p4485_p0 = scmp.lt.s32.totalorder %s4646_s22, %s4646_s22 }
  0x3c   :  { %p4481_p13 = scmp.ne.s32.totalorder %s4646_s22, %s4480_s21  ;;  %p4486_p1 = scmp.lt.s32.totalorder %s4480_s21, %s4480_s21 }
  0x3e   :  { %p4487_p2 = por %p4486_p1, %p4485_p0 }
  0x40   :  { %p4488_p3 = pnand %p4487_p2, %p4481_p13 }
  0x42   :  { %4491 = shalt.err (!%p4488_p3)
}
  0x43   :  { %58 = dma.hbm_to_vmem [thread:$0]  %s5032_s4, 512, %s4646_s22, [#allocation6], %s4546_s25, %s4546_s25, %s4547_s26  }
  0x44   :  { %s4550_s23 = smov [#allocation10]   ;;  %s4492_s29 = scalar_lea.hbm %s5036_s8, 512 }
  0x45   :  { %s80_s24 = sshll.u32 %s4550_s23, 4  ;;  %p4493_p4 = scmp.ne.s32.totalorder %s5036_s8, %s4492_s29  ;;  %s81_s24 = int_to_ptr.vmem [resolvable:$true] %s80_s24 }
  0x46   :  { %p4496_p5 = scmp.lt.u32.totalorder %s4492_s29, %s5036_s8 }
  0x48   :  { %p4498_p6 = pnand %p4496_p5, %p4493_p4 }
  0x4a   :  { %4501 = shalt.err (!%p4498_p6)
}
  0x4b   :  { %s4502_s12 = scalar_lea.vmem %s81_s24, 512  ;;  %p4507_p8 = scmp.lt.s32.totalorder %s81_s24, %s81_s24 }
  0x4c   :  { %p4503_p7 = scmp.ne.s32.totalorder %s81_s24, %s4502_s12  ;;  %p4508_p9 = scmp.lt.s32.totalorder %s4502_s12, %s4502_s12 }
  0x4e   :  { %p4509_p10 = por %p4508_p9, %p4507_p8 }
  0x50   :  { %p4510_p11 = pnand %p4509_p10, %p4503_p7 }
  0x52   :  { %4513 = shalt.err (!%p4510_p11)
}
  0x53   :  { %86 = dma.hbm_to_vmem [thread:$0]  %s5036_s8, 512, %s81_s24, [#allocation9], %s4546_s25, %s4546_s25, %s4547_s26  }
  0x54   :  { %4536 = dma.done.wait [#allocation3], 256  }
  0x55   :  { %4537 = vsyncadd [#allocation3], 4294967040 }
  0x56   :  { %4538 = dma.done.wait [#allocation6], 768  }
  0x57   :  { %4539 = vsyncadd [#allocation6], 4294966528 }
  0x58   :  { %4540 = dma.done.wait [#allocation9], 1024  }
  0x59   :  { %4541 = vsyncadd [#allocation9], 4294966272  ;;  %vm119_vm0 = vcmask 261120   ;;  %v4698_v0 = vld [vmem:[#allocation2] sm:$0xff]  ;;  %v4700_v1 = vld [vmem:[#allocation2 + $0x8] sm:$0xff]  ;;  %v4551_v51 = vmov 0.0  }
  0x5a   :  { %v203_v2 = vsel %vm119_vm0, %v4698_v0, 0.0  ;;  %v212_v3 = vmul.f32 %v4698_v0, %v4698_v0  ;;  %v213_v4 = vmul.f32 %v4700_v1, %v4700_v1  ;;  %v206_v6 = vsel %vm119_vm0, %v4700_v1, 0.0  ;;  %v250_v8 = vld [vmem:[#allocation7] sm:$0xff]  ;;  %v251_v9 = vld [vmem:[#allocation7 + $0x8] sm:$0xff]  ;;  %v252_v10 = vld [vmem:[#allocation7 + $0x10] sm:$0xff] }
  0x5b   :  { %204 = vadd.xlane.f32.xlu0 %v203_v2  ;;  %v4302_v11 = vpack.c.bf16 %v251_v9, %v250_v8  ;;  %v253_v12 = vld [vmem:[#allocation7 + $0x18] sm:$0xff]  ;;  %v3955_v30 = vld [vmem:[%s5030_s2] ss:$0 sm:$0xff]  ;;  %v109_v46 = vld [vmem:[#allocation10 + $0x8] sm:$0xff]  ;;  %vm4552_vm1 = vmmov 0   ;;  %vm502_vm2 = vcmask 64512  }
  0x5c   :  { %v214_v5 = vsel %vm119_vm0, %v212_v3, 0.0  ;;  %v217_v7 = vsel %vm119_vm0, %v213_v4, 0.0  ;;  %v4306_v13 = vpack.c.bf16 %v253_v12, %v252_v10  ;;  %v3956_v32 = vld [vmem:[%s5031_s3] ss:$0 sm:$0xff]  ;;  %v110_v47 = vld [vmem:[#allocation10 + $0x10] sm:$0xff]  ;;  %v111_v49 = vld [vmem:[#allocation10 + $0x18] sm:$0xff] }
  0x5d   :  { %215 = vadd.xlane.f32.xlu1 %v214_v5  ;;  %4303 = vmatprep.subr.bf16.mxu1 %v4302_v11  ;;  %v3957_v40 = vld [vmem:[%s5033_s5] ss:$0 sm:$0xff]  ;;  %v106_v50 = vld [vmem:[#allocation5] sm:$0xff]  ;;  %v4298_v52 = vpack.c.bf16 %v111_v49, %v110_v47  ;;  %v107_v53 = vld [vmem:[#allocation5 + $0x8] sm:$0xff] }
  0x5e   :  { %4305 = vmatpush3.bf16.msra.mxu1 %v4302_v11  ;;  %v108_v45 = vld [vmem:[#allocation10] sm:$0xff]  ;;  %4109 = vmatprep.mubr.msk.f32.mxu0 %vm119_vm0, %v106_v50 }
  0x5f   :  { %207 = vadd.xlane.f32.xlu0 %v206_v6  ;;  %4307 = vmatprep.subr.bf16.mxu1 %v4306_v13  ;;  %v4294_v48 = vpack.c.bf16 %v109_v46, %v108_v45  ;;  %v4740_v62 = vld [vmem:[%s5037_s9] ss:$0 sm:$0xff] }
  0x61   :  { %218 = vadd.xlane.f32.xlu1 %v217_v7  ;;  %4295 = vmatprep.subr.bf16.mxu0 %v4294_v48 }
  0x62   :  { %4309 = vmatpush3.bf16.msra.mxu1 %v4306_v13  ;;  %4297 = vmatpush3.bf16.msra.mxu0 %v4294_v48 }
  0x63   :  { %4128 = vmatprep.subr.mxu1 %v4551_v51  ;;  %4299 = vmatprep.subr.bf16.mxu0 %v4298_v52 }
  0x66   :  { %4301 = vmatpush3.bf16.msra.mxu0 %v4298_v52 }
  0x67   :  { %4123 = vmatprep.subr.mxu0 %v4551_v51 }
  0x69   :  { %4110 = vmatmul.mubr.msk.f32.vlgmr.msra.gmra.mrb[0].mxu0 %vm119_vm0, %v107_v53 }
  0x6a   :  { %4125 = vmatprep.mubr.msk.f32.mxu0 %vm4552_vm1, %v4551_v51 }
  0xe8   :  { %v205_v14 = vpop.xlane.xlu0 %204 }
  0xe9   :  { %v210_v15 = vmul.f32 0.03125, %v205_v14 }
  0xea   :  { %v216_v16 = vpop.xlane.xlu1 %215 }
  0xeb   :  { %v222_v17 = vmul.f32 %v210_v15, %v210_v15  ;;  %v220_v18 = vmul.f32 0.03125, %v216_v16  ;;  %v226_v28 = vsub.f32 %v4698_v0, %v210_v15 }
  0xec   :  { %v208_v19 = vpop.xlane.xlu0 %207 }
  0xed   :  { %v224_v20 = vsub.f32 %v220_v18, %v222_v17  ;;  %v211_v21 = vmul.f32 0.03125, %v208_v19 }
  0xee   :  { %v219_v22 = vpop.xlane.xlu1 %218 }
  0xef   :  { %v228_v23 = vadd.f32 1e-05, %v224_v20  ;;  %v223_v24 = vmul.f32 %v211_v21, %v211_v21  ;;  %v221_v25 = vmul.f32 0.03125, %v219_v22  ;;  %v227_v33 = vsub.f32 %v4700_v1, %v211_v21 }
  0xf1   :  { %4328 = vrsqrt.f32 %v228_v23  ;;  %v225_v26 = vsub.f32 %v221_v25, %v223_v24 }
  0xf3   :  { %v229_v27 = vadd.f32 1e-05, %v225_v26 }
  0xf5   :  { %4330 = vrsqrt.f32 %v229_v27 }
  0xfb   :  { %v4329_v29 = vpop.eup %4328 }
  0xfc   :  { %v232_v31 = vmul.f32 %v4329_v29, %v226_v28 }
  0xfe   :  { %v240_v34 = vmul.f32 %v3955_v30, %v232_v31 }
  0xff   :  { %v4331_v35 = vpop.eup %4330 }
 0x100   :  { %v233_v36 = vmul.f32 %v4331_v35, %v227_v33  ;;  %v248_v37 = vadd.f32 %v3956_v32, %v240_v34 }
 0x102   :  { %v241_v38 = vmul.f32 %v3955_v30, %v233_v36  ;;  %4120 = vmatprep.mubr.msk.f32.mxu1 %vm119_vm0, %v248_v37 }
 0x104   :  { %v249_v39 = vadd.f32 %v3956_v32, %v241_v38 }
 0x106   :  { %4121 = vmatmul.mubr.msk.f32.vlgmr.msra.gmra.mrb[0].mxu1 %vm119_vm0, %v249_v39 }
 0x107   :  { %4130 = vmatprep.mubr.msk.f32.mxu1 %vm4552_vm1, %v4551_v51 }
 0x13c   :  { %v4111_v63 = vpop.f32.mrb[0].mxu0 }
 0x13d   :  { %v4743_v2 = vadd.f32 %v4111_v63, %v4740_v62  ;;  %v4745_v3 = vpop.f32.mrb[1].mxu0 }
 0x1d9   :  { %v4122_v41 = vpop.f32.mrb[0].mxu1 }
 0x1da   :  { %v4725_v42 = vadd.f32 %v4122_v41, %v3957_v40  ;;  %v333_v43 = vpop.f32.mrb[1].mxu1 }
 0x1db   :  { %v334_v44 = vadd.f32 %v3957_v40, %v333_v43 }
 0x1dd   :  { %342 = vxpose.xlu0.b32.start.end [1/1] (short) (narrow) %v334_v44, 96 }
 0x25d   :  { %v358_v54 = vpop.trf.xlu0 }
 0x25e   :  { %374 = vxpose.xlu1.b32.start.end [1/1] (short) (narrow) %v358_v54, 8 }
 0x261   :  { %v359_v55 = vpop.trf.xlu0 }
 0x262   :  { %406 = vxpose.xlu0.b32.start.end [1/1] (short) (narrow) %v359_v55, 8 }
 0x265   :  { %v360_v56 = vpop.trf.xlu0 }
 0x266   :  { %438 = vxpose.xlu1.b32.start.end [1/1] (short) (narrow) %v360_v56, 8 }
 0x269   :  { %v361_v57 = vpop.trf.xlu0 }
 0x26a   :  { %470 = vxpose.xlu1.b32.start.end [1/1] (short) (narrow) %v361_v57, 8 }
 0x26d   :  { %v362_v58 = vpop.trf.xlu0 }
 0x26e   :  { %4124 = vmatpush3.msra.mxu0 %v362_v58 }
 0x26f   :  { %4133 = vmatprep.subr.mxu0 %v4551_v51 }
 0x271   :  { %v363_v59 = vpop.trf.xlu0 }
 0x272   :  { %4129 = vmatpush3.msra.mxu1 %v363_v59 }
 0x273   :  { %4138 = vmatprep.subr.mxu1 %v4551_v51 }
 0x275   :  { %v364_v60 = vpop.trf.xlu0 }
 0x279   :  { %v365_v61 = vpop.trf.xlu0 }
 0x27d   :  { %v4747_v4 = vpop.trf.xlu0 }
 0x281   :  { %v4749_v5 = vpop.trf.xlu0 }
 0x285   :  { %v4751_v6 = vpop.trf.xlu0 }
 0x289   :  { %v4753_v7 = vpop.trf.xlu0 }
 0x2de   :  { %v390_v8 = vpop.trf.xlu1 }
 0x2df   :  { %4126 = vmatmul.mubr.msk.f32.vlgmr.msra.gmra.mrb[2].mxu0 %vm502_vm2, %v390_v8 }
 0x2e0   :  { %4134 = vmatpush3.msra.mxu0 %v364_v60  ;;  %4135 = vmatprep.mubr.msk.f32.mxu0 %vm4552_vm1, %v4551_v51 }
 0x2e1   :  { %4143 = vmatprep.subr.mxu0 %v4551_v51 }
 0x2e2   :  { %v422_v9 = vpop.trf.xlu0 }
 0x2e3   :  { %4131 = vmatmul.mubr.msk.f32.vlgmr.msra.gmra.mrb[2].mxu1 %vm502_vm2, %v422_v9 }
 0x2e4   :  { %4139 = vmatpush3.msra.mxu1 %v365_v61  ;;  %4140 = vmatprep.mubr.msk.f32.mxu1 %vm4552_vm1, %v4551_v51 }
 0x2e5   :  { %4148 = vmatprep.subr.mxu1 %v4551_v51 }
 0x2e6   :  { %v454_v10 = vpop.trf.xlu1 }
 0x2e7   :  { %4136 = vmatmul.mubr.msk.f32.vlgmr.msra.gmra.mrb[4].mxu0 %vm502_vm2, %v454_v10 }
 0x2e8   :  { %4145 = vmatprep.mubr.msk.f32.mxu0 %vm4552_vm1, %v4551_v51 }
 0x2ea   :  { %v486_v11 = vpop.trf.xlu1 }
 0x2eb   :  { %4141 = vmatmul.mubr.msk.f32.vlgmr.msra.gmra.mrb[4].mxu1 %vm502_vm2, %v486_v11 }
 0x2ec   :  { %4150 = vmatprep.mubr.msk.f32.mxu1 %vm4552_vm1, %v4551_v51 }
 0x3b2   :  { %v572_v12 = vpop.f32.mrb[2].mxu0 }
 0x3b3   :  { %v4127_v13 = vpop.f32.mrb[3].mxu0  ;;  %v795_v14 = vsel %vm502_vm2, %v572_v12, -inf }
 0x3b4   :  { %796 = vmax.xlane.f32.xlu1 %v795_v14 }
 0x3b6   :  { %v645_v15 = vpop.f32.mrb[2].mxu1 }
 0x3b7   :  { %v4132_v16 = vpop.f32.mrb[3].mxu1  ;;  %v798_v17 = vsel %vm502_vm2, %v645_v15, -inf }
 0x3b8   :  { %799 = vmax.xlane.f32.xlu0 %v798_v17 }
 0x3ba   :  { %v718_v18 = vpop.f32.mrb[4].mxu0 }
 0x3bb   :  { %v4137_v19 = vpop.f32.mrb[5].mxu0  ;;  %v801_v20 = vsel %vm502_vm2, %v718_v18, -inf }
 0x3bc   :  { %802 = vmax.xlane.f32.xlu1 %v801_v20 }
 0x3be   :  { %v791_v21 = vpop.f32.mrb[4].mxu1 }
 0x3bf   :  { %v4142_v22 = vpop.f32.mrb[5].mxu1  ;;  %v804_v23 = vsel %vm502_vm2, %v791_v21, -inf }
 0x3c0   :  { %805 = vmax.xlane.f32.xlu1 %v804_v23 }
 0x441   :  { %v797_v24 = vpop.xlane.xlu1 %796 }
 0x442   :  { %v807_v25 = vsub.f32 %v572_v12, %v797_v24 }
 0x444   :  { %v811_v26 = vmul.f32 1.442695, %v807_v25 }
 0x445   :  { %v800_v27 = vpop.xlane.xlu0 %799 }
 0x446   :  { %4332 = vpow2.f32 %v811_v26  ;;  %v808_v28 = vsub.f32 %v645_v15, %v800_v27 }
 0x448   :  { %v813_v29 = vmul.f32 1.442695, %v808_v28 }
 0x449   :  { %v803_v30 = vpop.xlane.xlu1 %802 }
 0x44a   :  { %4334 = vpow2.f32 %v813_v29  ;;  %v809_v31 = vsub.f32 %v718_v18, %v803_v30 }
 0x44c   :  { %v815_v32 = vmul.f32 1.442695, %v809_v31 }
 0x44d   :  { %v806_v33 = vpop.xlane.xlu1 %805 }
 0x44e   :  { %4336 = vpow2.f32 %v815_v32  ;;  %v810_v34 = vsub.f32 %v791_v21, %v806_v33 }
 0x450   :  { %v4333_v35 = vpop.eup %4332  ;;  %v817_v36 = vmul.f32 1.442695, %v810_v34 }
 0x451   :  { %v819_v37 = vsel %vm502_vm2, %v4333_v35, 0.0 }
 0x452   :  { %4338 = vpow2.f32 %v817_v36  ;;  %820 = vadd.xlane.f32.xlu1 %v819_v37 }
 0x454   :  { %v4335_v38 = vpop.eup %4334 }
 0x455   :  { %v822_v39 = vsel %vm502_vm2, %v4335_v38, 0.0 }
 0x456   :  { %823 = vadd.xlane.f32.xlu1 %v822_v39 }
 0x458   :  { %v4337_v40 = vpop.eup %4336 }
 0x459   :  { %v825_v41 = vsel %vm502_vm2, %v4337_v40, 0.0 }
 0x45a   :  { %826 = vadd.xlane.f32.xlu1 %v825_v41 }
 0x45c   :  { %v4339_v43 = vpop.eup %4338 }
 0x45d   :  { %v828_v44 = vsel %vm502_vm2, %v4339_v43, 0.0 }
 0x45e   :  { %829 = vadd.xlane.f32.xlu1 %v828_v44 }
 0x491   :  { %1175 = vxpose.xlu1.b32.start.end [1/1] (short) (narrow) %v4725_v42, 96 }
 0x4df   :  { %v821_v45 = vpop.xlane.xlu1 %820 }
 0x4e0   :  { %4340 = vrcp.f32 %v821_v45 }
 0x4e3   :  { %v824_v46 = vpop.xlane.xlu1 %823 }
 0x4e4   :  { %4342 = vrcp.f32 %v824_v46 }
 0x4e7   :  { %v827_v47 = vpop.xlane.xlu1 %826 }
 0x4e8   :  { %4344 = vrcp.f32 %v827_v47 }
 0x4ea   :  { %v4341_v48 = vpop.eup %4340 }
 0x4eb   :  { %v835_v49 = vmul.f32 %v4341_v48, %v4333_v35  ;;  %v830_v50 = vpop.xlane.xlu1 %829 }
 0x4ec   :  { %4346 = vrcp.f32 %v830_v50 }
 0x4ed   :  { %4144 = vmatpush3.xpose.msk.msra.mxu0 %vm502_vm2, %v835_v49 }
 0x4ee   :  { %v4343_v52 = vpop.eup %4342  ;;  %4153 = vmatprep.subr.mxu0 %v4551_v51 }
 0x4ef   :  { %v836_v53 = vmul.f32 %v4343_v52, %v4335_v38 }
 0x4f0   :  { %4146 = vmatmul.mubr.msk.f32.vlgmr.msra.gmra.mrb[6].mxu0 %vm502_vm2, %v4747_v4 }
 0x4f1   :  { %4149 = vmatpush3.xpose.msk.msra.mxu1 %vm502_vm2, %v836_v53  ;;  %4155 = vmatprep.mubr.msk.f32.mxu0 %vm4552_vm1, %v4551_v51 }
 0x4f2   :  { %v4345_v42 = vpop.eup %4344  ;;  %4158 = vmatprep.subr.mxu1 %v4551_v51 }
 0x4f3   :  { %v837_v54 = vmul.f32 %v4345_v42, %v4337_v40 }
 0x4f4   :  { %4151 = vmatmul.mubr.msk.f32.vlgmr.msra.gmra.mrb[6].mxu1 %vm502_vm2, %v4749_v5 }
 0x4f5   :  { %4154 = vmatpush3.xpose.msk.msra.mxu0 %vm502_vm2, %v837_v54  ;;  %4160 = vmatprep.mubr.msk.f32.mxu1 %vm4552_vm1, %v4551_v51 }
 0x4f6   :  { %v4347_v55 = vpop.eup %4346  ;;  %4163 = vmatprep.subr.mxu0 %v4551_v51 }
 0x4f7   :  { %v838_v56 = vmul.f32 %v4347_v55, %v4339_v43 }
 0x4f8   :  { %4156 = vmatmul.mubr.msk.f32.vlgmr.msra.gmra.mrb[8].mxu0 %vm502_vm2, %v4751_v6 }
 0x4f9   :  { %4159 = vmatpush3.xpose.msk.msra.mxu1 %vm502_vm2, %v838_v56  ;;  %4165 = vmatprep.mubr.msk.f32.mxu0 %vm4552_vm1, %v4551_v51 }
 0x4fa   :  { %4168 = vmatprep.subr.mxu1 %v4551_v51 }
 0x4fc   :  { %4161 = vmatmul.mubr.msk.f32.vlgmr.msra.gmra.mrb[8].mxu1 %vm502_vm2, %v4753_v7 }
 0x4fd   :  { %4170 = vmatprep.mubr.msk.f32.mxu1 %vm4552_vm1, %v4551_v51 }
 0x511   :  { %v1191_v57 = vpop.trf.xlu1 }
 0x512   :  { %1207 = vxpose.xlu0.b32.start.end [1/1] (short) (narrow) %v1191_v57, 8 }
 0x515   :  { %v1192_v58 = vpop.trf.xlu1 }
 0x516   :  { %1239 = vxpose.xlu1.b32.start.end [1/1] (short) (narrow) %v1192_v58, 8 }
 0x519   :  { %v1193_v59 = vpop.trf.xlu1 }
 0x51a   :  { %1271 = vxpose.xlu0.b32.start.end [1/1] (short) (narrow) %v1193_v59, 8 }
 0x51d   :  { %v1194_v60 = vpop.trf.xlu1 }
 0x51e   :  { %1303 = vxpose.xlu0.b32.start.end [1/1] (short) (narrow) %v1194_v60, 8 }
 0x521   :  { %v1195_v61 = vpop.trf.xlu1 }
 0x522   :  { %4164 = vmatpush3.msra.mxu0 %v1195_v61 }
 0x523   :  { %4173 = vmatprep.subr.mxu0 %v4551_v51 }
 0x525   :  { %v1196_v63 = vpop.trf.xlu1 }
 0x526   :  { %4169 = vmatpush3.msra.mxu1 %v1196_v63 }
 0x527   :  { %4178 = vmatprep.subr.mxu1 %v4551_v51 }
 0x529   :  { %v1197_v4 = vpop.trf.xlu1 }
 0x52d   :  { %v1198_v5 = vpop.trf.xlu1 }
 0x531   :  { %v4804_v6 = vpop.trf.xlu1 }
 0x535   :  { %v4806_v7 = vpop.trf.xlu1 }
 0x539   :  { %v4808_v8 = vpop.trf.xlu1 }
 0x53d   :  { %v4810_v9 = vpop.trf.xlu1 }
 0x592   :  { %v1223_v10 = vpop.trf.xlu0 }
 0x593   :  { %4166 = vmatmul.mubr.msk.f32.vlgmr.msra.gmra.mrb[10].mxu0 %vm502_vm2, %v1223_v10 }
 0x594   :  { %4174 = vmatpush3.msra.mxu0 %v1197_v4  ;;  %4175 = vmatprep.mubr.msk.f32.mxu0 %vm4552_vm1, %v4551_v51 }
 0x595   :  { %4183 = vmatprep.subr.mxu0 %v4551_v51 }
 0x596   :  { %v1255_v11 = vpop.trf.xlu1 }
 0x597   :  { %4171 = vmatmul.mubr.msk.f32.vlgmr.msra.gmra.mrb[10].mxu1 %vm502_vm2, %v1255_v11 }
 0x598   :  { %4179 = vmatpush3.msra.mxu1 %v1198_v5  ;;  %4180 = vmatprep.mubr.msk.f32.mxu1 %vm4552_vm1, %v4551_v51 }
 0x599   :  { %4188 = vmatprep.subr.mxu1 %v4551_v51 }
 0x59a   :  { %v1287_v12 = vpop.trf.xlu0 }
 0x59b   :  { %4176 = vmatmul.mubr.msk.f32.vlgmr.msra.gmra.mrb[12].mxu0 %vm502_vm2, %v1287_v12 }
 0x59c   :  { %4185 = vmatprep.mubr.msk.f32.mxu0 %vm4552_vm1, %v4551_v51 }
 0x59e   :  { %v1319_v13 = vpop.trf.xlu0 }
 0x59f   :  { %4181 = vmatmul.mubr.msk.f32.vlgmr.msra.gmra.mrb[12].mxu1 %vm502_vm2, %v1319_v13 }
 0x5a0   :  { %4190 = vmatprep.mubr.msk.f32.mxu1 %vm4552_vm1, %v4551_v51 }
 0x5c3   :  { %v911_v14 = vpop.f32.mrb[6].mxu0 }
 0x5c4   :  { %v4147_v15 = vpop.f32.mrb[7].mxu0 }
 0x5c7   :  { %v987_v16 = vpop.f32.mrb[6].mxu1 }
 0x5c8   :  { %v4152_v17 = vpop.f32.mrb[7].mxu1 }
 0x5cb   :  { %v1063_v18 = vpop.f32.mrb[8].mxu0 }
 0x5cc   :  { %v4157_v19 = vpop.f32.mrb[9].mxu0 }
 0x5cf   :  { %v1139_v20 = vpop.f32.mrb[8].mxu1 }
 0x5d0   :  { %v4162_v21 = vpop.f32.mrb[9].mxu1 }
 0x666   :  { %v1404_v22 = vpop.f32.mrb[10].mxu0 }
 0x667   :  { %v4167_v23 = vpop.f32.mrb[11].mxu0  ;;  %v1627_v24 = vsel %vm502_vm2, %v1404_v22, -inf }
 0x668   :  { %1628 = vmax.xlane.f32.xlu0 %v1627_v24 }
 0x66a   :  { %v1477_v25 = vpop.f32.mrb[10].mxu1 }
 0x66b   :  { %v4172_v26 = vpop.f32.mrb[11].mxu1  ;;  %v1630_v27 = vsel %vm502_vm2, %v1477_v25, -inf }
 0x66c   :  { %1631 = vmax.xlane.f32.xlu1 %v1630_v27  ;;  %v3986_v26 = vld [vmem:[%s5030_s2 + $0x1] ss:$0 sm:$0xff] }
 0x66e   :  { %v1550_v28 = vpop.f32.mrb[12].mxu0 }
 0x66f   :  { %v4177_v29 = vpop.f32.mrb[13].mxu0  ;;  %v1633_v30 = vsel %vm502_vm2, %v1550_v28, -inf }
 0x670   :  { %1634 = vmax.xlane.f32.xlu0 %v1633_v30  ;;  %v3987_v30 = vld [vmem:[%s5031_s3 + $0x1] ss:$0 sm:$0xff] }
 0x672   :  { %v1623_v31 = vpop.f32.mrb[12].mxu1 }
 0x673   :  { %v4182_v32 = vpop.f32.mrb[13].mxu1  ;;  %v1636_v33 = vsel %vm502_vm2, %v1623_v31, -inf }
 0x674   :  { %1637 = vmax.xlane.f32.xlu0 %v1636_v33 }
 0x6f5   :  { %v1629_v34 = vpop.xlane.xlu0 %1628 }
 0x6f6   :  { %v1639_v35 = vsub.f32 %v1404_v22, %v1629_v34 }
 0x6f8   :  { %v1643_v36 = vmul.f32 1.442695, %v1639_v35 }
 0x6f9   :  { %v1632_v37 = vpop.xlane.xlu1 %1631 }
 0x6fa   :  { %4348 = vpow2.f32 %v1643_v36  ;;  %v1640_v38 = vsub.f32 %v1477_v25, %v1632_v37 }
 0x6fc   :  { %v1645_v39 = vmul.f32 1.442695, %v1640_v38 }
 0x6fd   :  { %v1635_v40 = vpop.xlane.xlu0 %1634 }
 0x6fe   :  { %4350 = vpow2.f32 %v1645_v39  ;;  %v1641_v41 = vsub.f32 %v1550_v28, %v1635_v40  ;;  %v2059_v39 = vld [vmem:[#allocation8] sm:$0xff]  ;;  %v2060_v40 = vld [vmem:[#allocation8 + $0x8] sm:$0xff] }
 0x700   :  { %v1647_v43 = vmul.f32 1.442695, %v1641_v41  ;;  %v4310_v41 = vpack.c.bf16 %v2060_v40, %v2059_v39 }
 0x701   :  { %v1638_v44 = vpop.xlane.xlu0 %1637 }
 0x702   :  { %4352 = vpow2.f32 %v1647_v43  ;;  %v1642_v45 = vsub.f32 %v1623_v31, %v1638_v44  ;;  %v2061_v43 = vld [vmem:[#allocation8 + $0x10] sm:$0xff]  ;;  %v2062_v44 = vld [vmem:[#allocation8 + $0x18] sm:$0xff] }
 0x704   :  { %v4349_v46 = vpop.eup %4348  ;;  %v1649_v47 = vmul.f32 1.442695, %v1642_v45  ;;  %v4314_v45 = vpack.c.bf16 %v2062_v44, %v2061_v43 }
 0x705   :  { %v1651_v48 = vsel %vm502_vm2, %v4349_v46, 0.0 }
 0x706   :  { %4354 = vpow2.f32 %v1649_v47  ;;  %1652 = vadd.xlane.f32.xlu0 %v1651_v48 }
 0x708   :  { %v4351_v49 = vpop.eup %4350 }
 0x709   :  { %v1654_v50 = vsel %vm502_vm2, %v4351_v49, 0.0 }
 0x70a   :  { %1655 = vadd.xlane.f32.xlu0 %v1654_v50 }
 0x70c   :  { %v4353_v52 = vpop.eup %4352 }
 0x70d   :  { %v1657_v53 = vsel %vm502_vm2, %v4353_v52, 0.0 }
 0x70e   :  { %1658 = vadd.xlane.f32.xlu0 %v1657_v53 }
 0x710   :  { %v4355_v42 = vpop.eup %4354 }
 0x711   :  { %v1660_v54 = vsel %vm502_vm2, %v4355_v42, 0.0 }
 0x712   :  { %1661 = vadd.xlane.f32.xlu0 %v1660_v54 }
 0x73f   :  { %1143 = vxpose.xlu0.b32.start [1/4] (short) (narrow) %v911_v14, 8 }
 0x743   :  { %1144 = vxpose.xlu0.b32.cont [2/4] (short) (narrow) %v987_v16, 8 }
 0x747   :  { %1145 = vxpose.xlu0.b32.cont [3/4] (short) (narrow) %v1063_v18, 8 }
 0x74b   :  { %1146 = vxpose.xlu0.b32.end [4/4] (short) (narrow) %v1139_v20, 8 }
 0x793   :  { %v1653_v55 = vpop.xlane.xlu0 %1652 }
 0x794   :  { %4356 = vrcp.f32 %v1653_v55 }
 0x797   :  { %v1656_v56 = vpop.xlane.xlu0 %1655 }
 0x798   :  { %4358 = vrcp.f32 %v1656_v56 }
 0x79b   :  { %v1659_v57 = vpop.xlane.xlu0 %1658 }
 0x79c   :  { %4360 = vrcp.f32 %v1659_v57 }
 0x79e   :  { %v4357_v58 = vpop.eup %4356 }
 0x79f   :  { %v1667_v59 = vmul.f32 %v4357_v58, %v4349_v46  ;;  %v1662_v60 = vpop.xlane.xlu0 %1661 }
 0x7a0   :  { %4362 = vrcp.f32 %v1662_v60 }
 0x7a1   :  { %4184 = vmatpush3.xpose.msk.msra.mxu0 %vm502_vm2, %v1667_v59 }
 0x7a2   :  { %v4359_v61 = vpop.eup %4358  ;;  %4193 = vmatprep.subr.mxu0 %v4551_v51 }
 0x7a3   :  { %v1668_v63 = vmul.f32 %v4359_v61, %v4351_v49 }
 0x7a4   :  { %4186 = vmatmul.mubr.msk.f32.vlgmr.msra.gmra.mrb[14].mxu0 %vm502_vm2, %v4804_v6 }
 0x7a5   :  { %4189 = vmatpush3.xpose.msk.msra.mxu1 %vm502_vm2, %v1668_v63  ;;  %4195 = vmatprep.mubr.msk.f32.mxu0 %vm4552_vm1, %v4551_v51 }
 0x7a6   :  { %v4361_v4 = vpop.eup %4360  ;;  %4198 = vmatprep.subr.mxu1 %v4551_v51 }
 0x7a7   :  { %v1669_v5 = vmul.f32 %v4361_v4, %v4353_v52 }
 0x7a8   :  { %4191 = vmatmul.mubr.msk.f32.vlgmr.msra.gmra.mrb[14].mxu1 %vm502_vm2, %v4806_v7 }
 0x7a9   :  { %4194 = vmatpush3.xpose.msk.msra.mxu0 %vm502_vm2, %v1669_v5  ;;  %4200 = vmatprep.mubr.msk.f32.mxu1 %vm4552_vm1, %v4551_v51 }
 0x7aa   :  { %v4363_v10 = vpop.eup %4362  ;;  %4311 = vmatprep.subr.bf16.mxu0 %v4310_v41 }
 0x7ab   :  { %v1670_v11 = vmul.f32 %v4363_v10, %v4355_v42 }
 0x7ac   :  { %4196 = vmatmul.mubr.msk.f32.vlgmr.msra.gmra.mrb[16].mxu0 %vm502_vm2, %v4808_v8 }
 0x7ad   :  { %4199 = vmatpush3.xpose.msk.msra.mxu1 %vm502_vm2, %v1670_v11  ;;  %4313 = vmatpush3.bf16.msra.mxu0 %v4310_v41 }
 0x7ae   :  { %4214 = vmatprep.subr.mxu1 %v4551_v51  ;;  %4315 = vmatprep.subr.bf16.mxu0 %v4314_v45 }
 0x7b0   :  { %4201 = vmatmul.mubr.msk.f32.vlgmr.msra.gmra.mrb[16].mxu1 %vm502_vm2, %v4810_v9 }
 0x7b1   :  { %4216 = vmatprep.mubr.msk.f32.mxu1 %vm4552_vm1, %v4551_v51  ;;  %4317 = vmatpush3.bf16.msra.mxu0 %v4314_v45 }
 0x7b2   :  { %4224 = vmatprep.subr.mxu0 %v4551_v51 }
 0x7bf   :  { %v1159_v6 = vpop.trf.xlu0 }
 0x7c0   :  { %v4856_v7 = vadd.f32 %v1159_v6, %v4698_v0 }
 0x7c2   :  { %v2013_v12 = vsel %vm119_vm0, %v4856_v7, 0.0  ;;  %v2021_v8 = vmul.f32 %v4856_v7, %v4856_v7 }
 0x7c3   :  { %2014 = vadd.xlane.f32.xlu0 %v2013_v12 }
 0x7c4   :  { %v2023_v13 = vsel %vm119_vm0, %v2021_v8, 0.0 }
 0x7c7   :  { %2024 = vadd.xlane.f32.xlu0 %v2023_v13 }
 0x850   :  { %v2015_v14 = vpop.xlane.xlu0 %2014 }
 0x851   :  { %v2019_v15 = vmul.f32 0.03125, %v2015_v14 }
 0x853   :  { %v2031_v16 = vmul.f32 %v2019_v15, %v2019_v15  ;;  %v2035_v21 = vsub.f32 %v4856_v7, %v2019_v15 }
 0x854   :  { %v2025_v9 = vpop.xlane.xlu0 %2024 }
 0x855   :  { %v2029_v17 = vmul.f32 0.03125, %v2025_v9 }
 0x857   :  { %v2033_v18 = vsub.f32 %v2029_v17, %v2031_v16 }
 0x859   :  { %v2037_v19 = vadd.f32 1e-05, %v2033_v18 }
 0x85b   :  { %4364 = vrsqrt.f32 %v2037_v19 }
 0x865   :  { %v4365_v22 = vpop.eup %4364 }
 0x866   :  { %v2041_v25 = vmul.f32 %v4365_v22, %v2035_v21 }
 0x868   :  { %v2049_v28 = vmul.f32 %v3986_v26, %v2041_v25 }
 0x86a   :  { %v2057_v31 = vadd.f32 %v3987_v30, %v2049_v28 }
 0x86c   :  { %4211 = vmatprep.mubr.msk.f32.mxu0 %vm119_vm0, %v2057_v31 }
 0x877   :  { %v1743_v0 = vpop.f32.mrb[14].mxu0 }
 0x878   :  { %1975 = vxpose.xlu1.b32.start [1/4] (short) (narrow) %v1743_v0, 8  ;;  %v4187_v20 = vpop.f32.mrb[15].mxu0 }
 0x87b   :  { %v1819_v23 = vpop.f32.mrb[14].mxu1 }
 0x87c   :  { %1976 = vxpose.xlu1.b32.cont [2/4] (short) (narrow) %v1819_v23, 8  ;;  %v4192_v24 = vpop.f32.mrb[15].mxu1 }
 0x87f   :  { %v1895_v27 = vpop.f32.mrb[16].mxu0 }
 0x880   :  { %v4197_v29 = vpop.f32.mrb[17].mxu0  ;;  %1977 = vxpose.xlu1.b32.cont [3/4] (short) (narrow) %v1895_v27, 8 }
 0x883   :  { %v1971_v32 = vpop.f32.mrb[16].mxu1 }
 0x884   :  { %1978 = vxpose.xlu1.b32.end [4/4] (short) (narrow) %v1971_v32, 8  ;;  %v4202_v33 = vpop.f32.mrb[17].mxu1 }
 0x8f8   :  { %v1991_v34 = vpop.trf.xlu1 }
 0x8f9   :  { %v4872_v35 = vadd.f32 %v1991_v34, %v4700_v1  ;;  %v193_v1 = vadd.f32 %v4740_v62, %v4745_v3  ;;  %v3988_v62 = vld [vmem:[%s5035_s7] ss:$0 sm:$0xff] }
 0x8fb   :  { %v2016_v36 = vsel %vm119_vm0, %v4872_v35, 0.0  ;;  %v2022_v37 = vmul.f32 %v4872_v35, %v4872_v35 }
 0x8fc   :  { %2017 = vadd.xlane.f32.xlu1 %v2016_v36 }
 0x8fd   :  { %v2026_v38 = vsel %vm119_vm0, %v2022_v37, 0.0 }
 0x900   :  { %2027 = vadd.xlane.f32.xlu1 %v2026_v38 }
 0x933   :  { %2183 = vxpose.xlu1.b32.start.end [1/1] (short) (narrow) %v193_v1, 64 }
 0x989   :  { %v2018_v46 = vpop.xlane.xlu1 %2017 }
 0x98a   :  { %v2020_v47 = vmul.f32 0.03125, %v2018_v46 }
 0x98c   :  { %v2032_v49 = vmul.f32 %v2020_v47, %v2020_v47  ;;  %v2036_v42 = vsub.f32 %v4872_v35, %v2020_v47 }
 0x98d   :  { %v2028_v48 = vpop.xlane.xlu1 %2027 }
 0x98e   :  { %v2030_v50 = vmul.f32 0.03125, %v2028_v48 }
 0x990   :  { %v2034_v52 = vsub.f32 %v2030_v50, %v2032_v49 }
 0x992   :  { %v2038_v53 = vadd.f32 1e-05, %v2034_v52 }
 0x994   :  { %4366 = vrsqrt.f32 %v2038_v53 }
 0x99e   :  { %v4367_v54 = vpop.eup %4366 }
 0x99f   :  { %v2042_v55 = vmul.f32 %v4367_v54, %v2036_v42 }
 0x9a1   :  { %v2050_v56 = vmul.f32 %v3986_v26, %v2042_v55 }
 0x9a3   :  { %v2058_v57 = vadd.f32 %v3987_v30, %v2050_v56 }
 0x9a5   :  { %4212 = vmatmul.mubr.msk.f32.vlgmr.msra.gmra.mrb[18].mxu0 %vm119_vm0, %v2058_v57 }
 0x9a6   :  { %4226 = vmatprep.mubr.msk.f32.mxu0 %vm4552_vm1, %v4551_v51 }
 0x9b3   :  { %v2199_v61 = vpop.trf.xlu1 }
 0x9b4   :  { %4215 = vmatpush3.msra.mxu1 %v2199_v61 }
 0x9b5   :  { %4219 = vmatprep.subr.mxu1 %v4551_v51 }
 0x9b7   :  { %v2200_v63 = vpop.trf.xlu1 }
 0x9bb   :  { %v2201_v4 = vpop.trf.xlu1 }
 0x9bc   :  { %4225 = vmatpush3.msra.mxu0 %v2201_v4 }
 0x9bd   :  { %4234 = vmatprep.subr.mxu0 %v4551_v51 }
 0x9bf   :  { %v2202_v12 = vpop.trf.xlu1 }
 0x9c3   :  { %v4893_v8 = vpop.trf.xlu1 }
 0x9c7   :  { %v4895_v13 = vpop.trf.xlu1 }
 0x9cb   :  { %v4897_v14 = vpop.trf.xlu1 }
 0x9cf   :  { %v4899_v15 = vpop.trf.xlu1 }
 0xa78   :  { %v4213_v3 = vpop.f32.mrb[18].mxu0 }
 0xa79   :  { %v4889_v58 = vadd.f32 %v4213_v3, %v3988_v62  ;;  %v2142_v59 = vpop.f32.mrb[19].mxu0 }
 0xa7a   :  { %v2143_v60 = vadd.f32 %v3988_v62, %v2142_v59 }
 0xa7c   :  { %2151 = vxpose.xlu0.b32.start.end [1/1] (short) (narrow) %v2143_v60, 32 }
 0xafc   :  { %v2167_v5 = vpop.trf.xlu0 }
 0xafd   :  { %2215 = vxpose.xlu0.b32.start.end [1/1] (short) (narrow) %v2167_v5, 8 }
 0xb00   :  { %v2168_v10 = vpop.trf.xlu0 }
 0xb01   :  { %2247 = vxpose.xlu1.b32.start.end [1/1] (short) (narrow) %v2168_v10, 8 }
 0xb04   :  { %v2169_v11 = vpop.trf.xlu0 }
 0xb05   :  { %2279 = vxpose.xlu0.b32.start.end [1/1] (short) (narrow) %v2169_v11, 8 }
 0xb08   :  { %v2170_v6 = vpop.trf.xlu0 }
 0xb09   :  { %2311 = vxpose.xlu0.b32.start.end [1/1] (short) (narrow) %v2170_v6, 8 }
 0xb7d   :  { %v2231_v9 = vpop.trf.xlu0 }
 0xb7e   :  { %4217 = vmatmul.mubr.msk.f32.vlgmr.msra.gmra.mrb[18].mxu1 %vm502_vm2, %v2231_v9 }
 0xb7f   :  { %4220 = vmatpush3.msra.mxu1 %v2200_v63  ;;  %4221 = vmatprep.mubr.msk.f32.mxu1 %vm4552_vm1, %v4551_v51 }
 0xb80   :  { %4229 = vmatprep.subr.mxu1 %v4551_v51 }
 0xb81   :  { %v2263_v16 = vpop.trf.xlu1 }
 0xb82   :  { %4222 = vmatmul.mubr.msk.f32.vlgmr.msra.gmra.mrb[20].mxu1 %vm502_vm2, %v2263_v16 }
 0xb83   :  { %4230 = vmatpush3.msra.mxu1 %v2202_v12  ;;  %4231 = vmatprep.mubr.msk.f32.mxu1 %vm4552_vm1, %v4551_v51 }
 0xb84   :  { %4239 = vmatprep.subr.mxu1 %v4551_v51 }
 0xb85   :  { %v2295_v17 = vpop.trf.xlu0 }
 0xb86   :  { %4227 = vmatmul.mubr.msk.f32.vlgmr.msra.gmra.mrb[20].mxu0 %vm502_vm2, %v2295_v17 }
 0xb87   :  { %4236 = vmatprep.mubr.msk.f32.mxu0 %vm4552_vm1, %v4551_v51 }
 0xb89   :  { %v2327_v18 = vpop.trf.xlu0 }
 0xb8a   :  { %4232 = vmatmul.mubr.msk.f32.vlgmr.msra.gmra.mrb[22].mxu1 %vm502_vm2, %v2327_v18 }
 0xb8b   :  { %4241 = vmatprep.mubr.msk.f32.mxu1 %vm4552_vm1, %v4551_v51 }
 0xc51   :  { %v2412_v19 = vpop.f32.mrb[18].mxu1 }
 0xc52   :  { %v2635_v0 = vsel %vm502_vm2, %v2412_v19, -inf  ;;  %v4218_v20 = vpop.f32.mrb[19].mxu1 }
 0xc53   :  { %2636 = vmax.xlane.f32.xlu0 %v2635_v0 }
 0xc55   :  { %v2485_v21 = vpop.f32.mrb[20].mxu1 }
 0xc56   :  { %v2638_v22 = vsel %vm502_vm2, %v2485_v21, -inf  ;;  %v4223_v23 = vpop.f32.mrb[21].mxu1 }
 0xc57   :  { %2639 = vmax.xlane.f32.xlu1 %v2638_v22 }
 0xc59   :  { %v2558_v24 = vpop.f32.mrb[20].mxu0 }
 0xc5a   :  { %v4228_v25 = vpop.f32.mrb[21].mxu0  ;;  %v2641_v26 = vsel %vm502_vm2, %v2558_v24, -inf }
 0xc5b   :  { %2642 = vmax.xlane.f32.xlu0 %v2641_v26 }
 0xc5d   :  { %v2631_v27 = vpop.f32.mrb[22].mxu1 }
 0xc5e   :  { %v2644_v28 = vsel %vm502_vm2, %v2631_v27, -inf  ;;  %v4233_v29 = vpop.f32.mrb[23].mxu1 }
 0xc5f   :  { %2645 = vmax.xlane.f32.xlu0 %v2644_v28 }
 0xce0   :  { %v2637_v30 = vpop.xlane.xlu0 %2636 }
 0xce1   :  { %v2647_v31 = vsub.f32 %v2412_v19, %v2637_v30 }
 0xce3   :  { %v2651_v32 = vmul.f32 1.442695, %v2647_v31 }
 0xce4   :  { %v2640_v33 = vpop.xlane.xlu1 %2639 }
 0xce5   :  { %4368 = vpow2.f32 %v2651_v32  ;;  %v2648_v34 = vsub.f32 %v2485_v21, %v2640_v33 }
 0xce7   :  { %v2653_v36 = vmul.f32 1.442695, %v2648_v34 }
 0xce8   :  { %v2643_v37 = vpop.xlane.xlu0 %2642 }
 0xce9   :  { %4370 = vpow2.f32 %v2653_v36  ;;  %v2649_v38 = vsub.f32 %v2558_v24, %v2643_v37 }
 0xceb   :  { %v2655_v39 = vmul.f32 1.442695, %v2649_v38 }
 0xcec   :  { %v2646_v40 = vpop.xlane.xlu0 %2645 }
 0xced   :  { %4372 = vpow2.f32 %v2655_v39  ;;  %v2650_v41 = vsub.f32 %v2631_v27, %v2646_v40 }
 0xcef   :  { %v4369_v43 = vpop.eup %4368  ;;  %v2657_v44 = vmul.f32 1.442695, %v2650_v41 }
 0xcf0   :  { %v2659_v45 = vsel %vm502_vm2, %v4369_v43, 0.0 }
 0xcf1   :  { %4374 = vpow2.f32 %v2657_v44  ;;  %2660 = vadd.xlane.f32.xlu0 %v2659_v45 }
 0xcf3   :  { %v4371_v1 = vpop.eup %4370 }
 0xcf4   :  { %v2662_v46 = vsel %vm502_vm2, %v4371_v1, 0.0 }
 0xcf5   :  { %2663 = vadd.xlane.f32.xlu1 %v2662_v46 }
 0xcf7   :  { %v4373_v47 = vpop.eup %4372 }
 0xcf8   :  { %v2665_v48 = vsel %vm502_vm2, %v4373_v47, 0.0 }
 0xcf9   :  { %2666 = vadd.xlane.f32.xlu0 %v2665_v48 }
 0xcfb   :  { %v4375_v49 = vpop.eup %4374 }
 0xcfc   :  { %v2668_v50 = vsel %vm502_vm2, %v4375_v49, 0.0 }
 0xcfd   :  { %2669 = vadd.xlane.f32.xlu1 %v2668_v50 }
 0xd26   :  { %3015 = vxpose.xlu0.b32.start.end [1/1] (short) (narrow) %v4889_v58, 32 }
 0xd30   :  { %3047 = vxpose.xlu1.b32.start.end [1/1] (short) (narrow) %v4743_v2, 64 }
 0xd7e   :  { %v2661_v52 = vpop.xlane.xlu0 %2660 }
 0xd7f   :  { %4376 = vrcp.f32 %v2661_v52 }
 0xd82   :  { %v2664_v53 = vpop.xlane.xlu1 %2663 }
 0xd83   :  { %4378 = vrcp.f32 %v2664_v53 }
 0xd86   :  { %v2667_v42 = vpop.xlane.xlu0 %2666 }
 0xd87   :  { %4380 = vrcp.f32 %v2667_v42 }
 0xd89   :  { %v4377_v54 = vpop.eup %4376 }
 0xd8a   :  { %v2675_v55 = vmul.f32 %v4377_v54, %v4369_v43  ;;  %v2670_v56 = vpop.xlane.xlu1 %2669 }
 0xd8b   :  { %4382 = vrcp.f32 %v2670_v56 }
 0xd8c   :  { %4235 = vmatpush3.xpose.msk.msra.mxu0 %vm502_vm2, %v2675_v55 }
 0xd8d   :  { %v4379_v57 = vpop.eup %4378  ;;  %4244 = vmatprep.subr.mxu0 %v4551_v51 }
 0xd8e   :  { %v2676_v62 = vmul.f32 %v4379_v57, %v4371_v1 }
 0xd8f   :  { %4237 = vmatmul.mubr.msk.f32.vlgmr.msra.gmra.mrb[22].mxu0 %vm502_vm2, %v4893_v8 }
 0xd90   :  { %4240 = vmatpush3.xpose.msk.msra.mxu1 %vm502_vm2, %v2676_v62  ;;  %4246 = vmatprep.mubr.msk.f32.mxu0 %vm4552_vm1, %v4551_v51 }
 0xd91   :  { %v4381_v2 = vpop.eup %4380  ;;  %4249 = vmatprep.subr.mxu1 %v4551_v51 }
 0xd92   :  { %v2677_v3 = vmul.f32 %v4381_v2, %v4373_v47 }
 0xd93   :  { %4242 = vmatmul.mubr.msk.f32.vlgmr.msra.gmra.mrb[24].mxu1 %vm502_vm2, %v4895_v13 }
 0xd94   :  { %4245 = vmatpush3.xpose.msk.msra.mxu0 %vm502_vm2, %v2677_v3  ;;  %4251 = vmatprep.mubr.msk.f32.mxu1 %vm4552_vm1, %v4551_v51 }
 0xd95   :  { %v4383_v58 = vpop.eup %4382  ;;  %4254 = vmatprep.subr.mxu0 %v4551_v51 }
 0xd96   :  { %v2678_v59 = vmul.f32 %v4383_v58, %v4375_v49 }
 0xd97   :  { %4247 = vmatmul.mubr.msk.f32.vlgmr.msra.gmra.mrb[24].mxu0 %vm502_vm2, %v4897_v14 }
 0xd98   :  { %4250 = vmatpush3.xpose.msk.msra.mxu1 %vm502_vm2, %v2678_v59  ;;  %4256 = vmatprep.mubr.msk.f32.mxu0 %vm4552_vm1, %v4551_v51 }
 0xd99   :  { %4259 = vmatprep.subr.mxu1 %v4551_v51 }
 0xd9b   :  { %4252 = vmatmul.mubr.msk.f32.vlgmr.msra.gmra.mrb[26].mxu1 %vm502_vm2, %v4899_v15 }
 0xd9c   :  { %4261 = vmatprep.mubr.msk.f32.mxu1 %vm4552_vm1, %v4551_v51 }
 0xda6   :  { %v3031_v60 = vpop.trf.xlu0 }
 0xda7   :  { %3079 = vxpose.xlu0.b32.start.end [1/1] (short) (narrow) %v3031_v60, 8 }
 0xdaa   :  { %v3032_v61 = vpop.trf.xlu0 }
 0xdab   :  { %3111 = vxpose.xlu1.b32.start.end [1/1] (short) (narrow) %v3032_v61, 8 }
 0xdae   :  { %v3033_v63 = vpop.trf.xlu0 }
 0xdaf   :  { %3143 = vxpose.xlu0.b32.start.end [1/1] (short) (narrow) %v3033_v63, 8 }
 0xdb0   :  { %v3063_v4 = vpop.trf.xlu1 }
 0xdb1   :  { %4255 = vmatpush3.msra.mxu0 %v3063_v4 }
 0xdb2   :  { %v3034_v5 = vpop.trf.xlu0  ;;  %4264 = vmatprep.subr.mxu0 %v4551_v51 }
 0xdb3   :  { %3175 = vxpose.xlu0.b32.start.end [1/1] (short) (narrow) %v3034_v5, 8 }
 0xdb4   :  { %v3064_v10 = vpop.trf.xlu1 }
 0xdb5   :  { %4260 = vmatpush3.msra.mxu1 %v3064_v10 }
 0xdb6   :  { %4269 = vmatprep.subr.mxu1 %v4551_v51 }
 0xdb8   :  { %v3065_v11 = vpop.trf.xlu1 }
 0xdbc   :  { %v3066_v6 = vpop.trf.xlu1 }
 0xdc0   :  { %v4951_v12 = vpop.trf.xlu1 }
 0xdc4   :  { %v4953_v8 = vpop.trf.xlu1 }
 0xdc8   :  { %v4955_v13 = vpop.trf.xlu1 }
 0xdcc   :  { %v4957_v14 = vpop.trf.xlu1 }
 0xe27   :  { %v3095_v15 = vpop.trf.xlu0 }
 0xe28   :  { %4257 = vmatmul.mubr.msk.f32.vlgmr.msra.gmra.mrb[26].mxu0 %vm502_vm2, %v3095_v15 }
 0xe29   :  { %4265 = vmatpush3.msra.mxu0 %v3065_v11  ;;  %4266 = vmatprep.mubr.msk.f32.mxu0 %vm4552_vm1, %v4551_v51 }
 0xe2a   :  { %4274 = vmatprep.subr.mxu0 %v4551_v51 }
 0xe2b   :  { %v3127_v9 = vpop.trf.xlu1 }
 0xe2c   :  { %4262 = vmatmul.mubr.msk.f32.vlgmr.msra.gmra.mrb[28].mxu1 %vm502_vm2, %v3127_v9 }
 0xe2d   :  { %4270 = vmatpush3.msra.mxu1 %v3066_v6  ;;  %4271 = vmatprep.mubr.msk.f32.mxu1 %vm4552_vm1, %v4551_v51 }
 0xe2e   :  { %4279 = vmatprep.subr.mxu1 %v4551_v51 }
 0xe2f   :  { %v3159_v16 = vpop.trf.xlu0 }
 0xe30   :  { %4267 = vmatmul.mubr.msk.f32.vlgmr.msra.gmra.mrb[28].mxu0 %vm502_vm2, %v3159_v16 }
 0xe31   :  { %4276 = vmatprep.mubr.msk.f32.mxu0 %vm4552_vm1, %v4551_v51 }
 0xe33   :  { %v3191_v17 = vpop.trf.xlu0 }
 0xe34   :  { %4272 = vmatmul.mubr.msk.f32.vlgmr.msra.gmra.mrb[30].mxu1 %vm502_vm2, %v3191_v17 }
 0xe35   :  { %4281 = vmatprep.mubr.msk.f32.mxu1 %vm4552_vm1, %v4551_v51 }
 0xe62   :  { %v2751_v18 = vpop.f32.mrb[22].mxu0 }
 0xe63   :  { %v4238_v19 = vpop.f32.mrb[23].mxu0 }
 0xe66   :  { %v2827_v0 = vpop.f32.mrb[24].mxu1 }
 0xe67   :  { %v4243_v20 = vpop.f32.mrb[25].mxu1 }
 0xe6a   :  { %v2903_v21 = vpop.f32.mrb[24].mxu0 }
 0xe6b   :  { %v4248_v22 = vpop.f32.mrb[25].mxu0 }
 0xe6c   :  { %v4018_v22 = vld [vmem:[%s5031_s3 + $0x2] ss:$0 sm:$0xff] }
 0xe6e   :  { %v2979_v23 = vpop.f32.mrb[26].mxu1 }
 0xe6f   :  { %v4253_v24 = vpop.f32.mrb[27].mxu1 }
 0xefb   :  { %v3276_v25 = vpop.f32.mrb[26].mxu0 }
 0xefc   :  { %v4258_v26 = vpop.f32.mrb[27].mxu0  ;;  %v3499_v27 = vsel %vm502_vm2, %v3276_v25, -inf }
 0xefd   :  { %3500 = vmax.xlane.f32.xlu0 %v3499_v27 }
 0xeff   :  { %v3349_v28 = vpop.f32.mrb[28].mxu1 }
 0xf00   :  { %v4263_v29 = vpop.f32.mrb[29].mxu1  ;;  %v3502_v30 = vsel %vm502_vm2, %v3349_v28, -inf }
 0xf01   :  { %3503 = vmax.xlane.f32.xlu1 %v3502_v30 }
 0xf03   :  { %v3422_v31 = vpop.f32.mrb[28].mxu0 }
 0xf04   :  { %v4268_v32 = vpop.f32.mrb[29].mxu0  ;;  %v3505_v33 = vsel %vm502_vm2, %v3422_v31, -inf }
 0xf05   :  { %3506 = vmax.xlane.f32.xlu0 %v3505_v33 }
 0xf07   :  { %v3495_v34 = vpop.f32.mrb[30].mxu1 }
 0xf08   :  { %v4273_v36 = vpop.f32.mrb[31].mxu1  ;;  %v3508_v37 = vsel %vm502_vm2, %v3495_v34, -inf }
 0xf09   :  { %3509 = vmax.xlane.f32.xlu0 %v3508_v37 }
 0xf8a   :  { %v3501_v38 = vpop.xlane.xlu0 %3500 }
 0xf8b   :  { %v3511_v39 = vsub.f32 %v3276_v25, %v3501_v38 }
 0xf8d   :  { %v3515_v40 = vmul.f32 1.442695, %v3511_v39 }
 0xf8e   :  { %v3504_v41 = vpop.xlane.xlu1 %3503 }
 0xf8f   :  { %4384 = vpow2.f32 %v3515_v40  ;;  %v3512_v43 = vsub.f32 %v3349_v28, %v3504_v41 }
 0xf91   :  { %v3517_v44 = vmul.f32 1.442695, %v3512_v43 }
 0xf92   :  { %v3507_v45 = vpop.xlane.xlu0 %3506 }
 0xf93   :  { %4386 = vpow2.f32 %v3517_v44  ;;  %v3513_v1 = vsub.f32 %v3422_v31, %v3507_v45 }
 0xf95   :  { %v3519_v46 = vmul.f32 1.442695, %v3513_v1 }
 0xf96   :  { %v3510_v47 = vpop.xlane.xlu0 %3509 }
 0xf97   :  { %4388 = vpow2.f32 %v3519_v46  ;;  %v3514_v48 = vsub.f32 %v3495_v34, %v3510_v47 }
 0xf99   :  { %v4385_v49 = vpop.eup %4384  ;;  %v3521_v50 = vmul.f32 1.442695, %v3514_v48 }
 0xf9a   :  { %v3523_v52 = vsel %vm502_vm2, %v4385_v49, 0.0 }
 0xf9b   :  { %4390 = vpow2.f32 %v3521_v50  ;;  %3524 = vadd.xlane.f32.xlu0 %v3523_v52 }
 0xf9d   :  { %v4387_v53 = vpop.eup %4386 }
 0xf9e   :  { %v3526_v42 = vsel %vm502_vm2, %v4387_v53, 0.0 }
 0xf9f   :  { %3527 = vadd.xlane.f32.xlu1 %v3526_v42 }
 0xfa1   :  { %v4389_v54 = vpop.eup %4388 }
 0xfa2   :  { %v3529_v55 = vsel %vm502_vm2, %v4389_v54, 0.0 }
 0xfa3   :  { %3530 = vadd.xlane.f32.xlu0 %v3529_v55 }
 0xfa5   :  { %v4391_v56 = vpop.eup %4390 }
 0xfa6   :  { %v3532_v57 = vsel %vm502_vm2, %v4391_v56, 0.0 }
 0xfa7   :  { %3533 = vadd.xlane.f32.xlu1 %v3532_v57 }
 0xfd0   :  { %2983 = vxpose.xlu0.b32.start [1/4] (short) (narrow) %v2751_v18, 8 }
 0xfd4   :  { %2984 = vxpose.xlu0.b32.cont [2/4] (short) (narrow) %v2827_v0, 8 }
 0xfd8   :  { %2985 = vxpose.xlu0.b32.cont [3/4] (short) (narrow) %v2903_v21, 8 }
 0xfdc   :  { %2986 = vxpose.xlu0.b32.end [4/4] (short) (narrow) %v2979_v23, 8 }
0x1028   :  { %v3525_v62 = vpop.xlane.xlu0 %3524 }
0x1029   :  { %4392 = vrcp.f32 %v3525_v62 }
0x102c   :  { %v3528_v2 = vpop.xlane.xlu1 %3527 }
0x102d   :  { %4394 = vrcp.f32 %v3528_v2 }
0x1030   :  { %v3531_v3 = vpop.xlane.xlu0 %3530 }
0x1031   :  { %4396 = vrcp.f32 %v3531_v3 }
0x1033   :  { %v4393_v58 = vpop.eup %4392 }
0x1034   :  { %v3539_v59 = vmul.f32 %v4393_v58, %v4385_v49  ;;  %v3534_v60 = vpop.xlane.xlu1 %3533 }
0x1035   :  { %4398 = vrcp.f32 %v3534_v60 }
0x1036   :  { %4275 = vmatpush3.xpose.msk.msra.mxu0 %vm502_vm2, %v3539_v59 }
0x1037   :  { %v4395_v61 = vpop.eup %4394  ;;  %4284 = vmatprep.subr.mxu0 %v4551_v51 }
0x1038   :  { %v3540_v63 = vmul.f32 %v4395_v61, %v4387_v53 }
0x1039   :  { %4277 = vmatmul.mubr.msk.f32.vlgmr.msra.gmra.mrb[30].mxu0 %vm502_vm2, %v4951_v12 }
0x103a   :  { %4280 = vmatpush3.xpose.msk.msra.mxu1 %vm502_vm2, %v3540_v63  ;;  %4286 = vmatprep.mubr.msk.f32.mxu0 %vm4552_vm1, %v4551_v51 }
0x103b   :  { %v4397_v4 = vpop.eup %4396  ;;  %4289 = vmatprep.subr.mxu1 %v4551_v51 }
0x103c   :  { %v3541_v5 = vmul.f32 %v4397_v4, %v4389_v54 }
0x103d   :  { %4282 = vmatmul.mubr.msk.f32.vlgmr.msra.gmra.mrb[32].mxu1 %vm502_vm2, %v4953_v8 }
0x103e   :  { %4285 = vmatpush3.xpose.msk.msra.mxu0 %vm502_vm2, %v3541_v5  ;;  %4291 = vmatprep.mubr.msk.f32.mxu1 %vm4552_vm1, %v4551_v51 }
0x103f   :  { %v4399_v10 = vpop.eup %4398 }
0x1040   :  { %v3542_v11 = vmul.f32 %v4399_v10, %v4391_v56 }
0x1041   :  { %4287 = vmatmul.mubr.msk.f32.vlgmr.msra.gmra.mrb[32].mxu0 %vm502_vm2, %v4955_v13 }
0x1042   :  { %4290 = vmatpush3.xpose.msk.msra.mxu1 %vm502_vm2, %v3542_v11 }
0x1045   :  { %4292 = vmatmul.mubr.msk.f32.vlgmr.msra.gmra.mrb[34].mxu1 %vm502_vm2, %v4957_v14 }
0x1050   :  { %v2999_v6 = vpop.trf.xlu0 }
0x1051   :  { %v3879_v12 = vadd.f32 %v2999_v6, %v4856_v7  ;;  %v4017_v7 = vld [vmem:[%s5030_s2 + $0x2] ss:$0 sm:$0xff]  ;;  %s4553_s2 = smov [#allocation11]  }
0x1052   :  { %s3938_s3 = sshll.u32 %s4553_s2, 4  ;;  %s3939_s3 = int_to_ptr.vmem [resolvable:$true] %s3938_s3 }
0x1053   :  { %v3885_v8 = vsel %vm119_vm0, %v3879_v12, 0.0  ;;  %v3893_v15 = vmul.f32 %v3879_v12, %v3879_v12  ;;  %s4514_s29 = scalar_lea.vmem %s3939_s3, 256  ;;  %p4519_p13 = scmp.lt.s32.totalorder %s3939_s3, %s3939_s3 }
0x1054   :  { %3886 = vadd.xlane.f32.xlu0 %v3885_v8  ;;  %p4515_p12 = scmp.ne.s32.totalorder %s3939_s3, %s4514_s29  ;;  %p4520_p0 = scmp.lt.s32.totalorder %s4514_s29, %s4514_s29 }
0x1055   :  { %v3895_v9 = vsel %vm119_vm0, %v3893_v15, 0.0 }
0x1056   :  { %p4521_p1 = por %p4520_p0, %p4519_p13 }
0x1058   :  { %3896 = vadd.xlane.f32.xlu0 %v3895_v9  ;;  %p4522_p2 = pnand %p4521_p1, %p4515_p12 }
0x10e1   :  { %v3887_v51 = vpop.xlane.xlu0 %3886 }
0x10e2   :  { %v3891_v16 = vmul.f32 0.03125, %v3887_v51 }
0x10e4   :  { %v3903_v18 = vmul.f32 %v3891_v16, %v3891_v16  ;;  %v3907_v20 = vsub.f32 %v3879_v12, %v3891_v16 }
0x10e5   :  { %v3897_v17 = vpop.xlane.xlu0 %3896 }
0x10e6   :  { %v3901_v13 = vmul.f32 0.03125, %v3897_v17 }
0x10e8   :  { %v3905_v19 = vsub.f32 %v3901_v13, %v3903_v18 }
0x10ea   :  { %v3909_v0 = vadd.f32 1e-05, %v3905_v19 }
0x10ec   :  { %4400 = vrsqrt.f32 %v3909_v0 }
0x10f6   :  { %v4401_v14 = vpop.eup %4400 }
0x10f7   :  { %v3913_v21 = vmul.f32 %v4401_v14, %v3907_v20 }
0x10f9   :  { %v3921_v23 = vmul.f32 %v4017_v7, %v3913_v21 }
0x10fb   :  { %v3929_v24 = vadd.f32 %v4018_v22, %v3921_v23 }
0x10fd   :  { %3931 = vst.msk [vmem:[#allocation11] sm:$0xff] %vm119_vm0, %v3929_v24 }
0x110c   :  { %v3615_v25 = vpop.f32.mrb[30].mxu0 }
0x110d   :  { %3847 = vxpose.xlu1.b32.start [1/4] (short) (narrow) %v3615_v25, 8  ;;  %v4278_v26 = vpop.f32.mrb[31].mxu0 }
0x1110   :  { %v3691_v27 = vpop.f32.mrb[32].mxu1 }
0x1111   :  { %3848 = vxpose.xlu1.b32.cont [2/4] (short) (narrow) %v3691_v27, 8  ;;  %v4283_v28 = vpop.f32.mrb[33].mxu1 }
0x1114   :  { %v3767_v29 = vpop.f32.mrb[32].mxu0 }
0x1115   :  { %v4288_v30 = vpop.f32.mrb[33].mxu0  ;;  %3849 = vxpose.xlu1.b32.cont [3/4] (short) (narrow) %v3767_v29, 8 }
0x1118   :  { %v3843_v31 = vpop.f32.mrb[34].mxu1 }
0x1119   :  { %3850 = vxpose.xlu1.b32.end [4/4] (short) (narrow) %v3843_v31, 8  ;;  %v4293_v32 = vpop.f32.mrb[35].mxu1 }
0x118d   :  { %v3863_v33 = vpop.trf.xlu1 }
0x118e   :  { %v3880_v34 = vadd.f32 %v3863_v33, %v4872_v35 }
0x1190   :  { %v3888_v36 = vsel %vm119_vm0, %v3880_v34, 0.0  ;;  %v3894_v37 = vmul.f32 %v3880_v34, %v3880_v34 }
0x1191   :  { %3889 = vadd.xlane.f32.xlu1 %v3888_v36 }
0x1192   :  { %v3898_v38 = vsel %vm119_vm0, %v3894_v37, 0.0 }
0x1195   :  { %3899 = vadd.xlane.f32.xlu1 %v3898_v38 }
0x121e   :  { %v3890_v39 = vpop.xlane.xlu1 %3889 }
0x121f   :  { %v3892_v40 = vmul.f32 0.03125, %v3890_v39 }
0x1221   :  { %v3904_v43 = vmul.f32 %v3892_v40, %v3892_v40  ;;  %v3908_v46 = vsub.f32 %v3880_v34, %v3892_v40 }
0x1222   :  { %v3900_v41 = vpop.xlane.xlu1 %3899 }
0x1223   :  { %v3902_v44 = vmul.f32 0.03125, %v3900_v41 }
0x1225   :  { %v3906_v45 = vsub.f32 %v3902_v44, %v3904_v43 }
0x1227   :  { %v3910_v1 = vadd.f32 1e-05, %v3906_v45 }
0x1229   :  { %4402 = vrsqrt.f32 %v3910_v1 }
0x1233   :  { %v4403_v47 = vpop.eup %4402 }
0x1234   :  { %v3914_v48 = vmul.f32 %v4403_v47, %v3908_v46 }
0x1236   :  { %v3922_v35 = vmul.f32 %v4017_v7, %v3914_v48 }
0x1238   :  { %v3930_v49 = vadd.f32 %v4018_v22, %v3922_v35 }
0x123a   :  { %3932 = vst.msk [vmem:[#allocation11 + $0x8] sm:$0xff] %vm119_vm0, %v3930_v49 }
0x123b   :  { %4525 = shalt.err (!%p4522_p2)
}
0x123c   :  { %s4526_s6 = scalar_lea.hbm %s5038_s10, 256 }
0x123d   :  { %p4527_p3 = scmp.ne.s32.totalorder %s5038_s10, %s4526_s6  ;;  %p4530_p4 = scmp.lt.u32.totalorder %s4526_s6, %s5038_s10 }
0x123f   :  { %p4532_p5 = pnand %p4530_p4, %p4527_p3 }
0x1241   :  { %4535 = shalt.err (!%p4532_p5)
}
0x1242   :  { %3944 = dma.vmem_to_hbm [thread:$0]  %s3939_s3, 256, %s5038_s10, [#allocation4], %s4546_s25, %s4546_s25, %s4547_s26  }
0x1243   :  { %4542 = dma.done.wait [#allocation4], 256  }
0x1244   :  { %4543 = vsyncadd [#allocation4], 4294967040 }
0x1245   :  { %3948 = vsyncpa [#allocation3], 1 }
0x1246   :  { %3949 = vsyncpa [#allocation6], 1 }
0x1247   :  { %3950 = vsyncpa [#allocation9], 1 }
0x1248   :  { %3951 = vsyncpa [#allocation4], 1 }

</bundles_post_ra>
